<compile_context>
chip_gen: v7x
topology: tpu7x:2x2x1
jax: 0.10.0
libtpu: 0.0.40
codegen_flags: <defaults>
</compile_context>

<pallas_src>
import functools

import jax
import jax.numpy as jnp
from jax import lax
from jax.experimental import pallas as pl
from jax.experimental.pallas import tpu as pltpu


def _axial_attention_kernel(x_ref, wqkv_ref, bqkv_ref, wo_ref, bo_ref, perm_ref,
                            o_ref, *, num_heads, seq_len, batch_block):
    # x_ref:    (Bt*S, E)   wqkv_ref: (E, 3E)   bqkv_ref: (1, 3E) f32
    # wo_ref:   (E, E)      bo_ref:   (1, E) f32   perm_ref: (S, S)
    # o_ref:    (Bt*S, E)
    S = seq_len
    H = num_heads
    E = wo_ref.shape[0]
    D = E // H
    Sg = S // H
    cdt = x_ref.dtype                                  # MXU input dtype (bf16)

    # --- fused QKV projection over ALL Bt*S rows: tall M fills the MXU -------
    # The 1/(sqrt(D)*H) mean-over-heads scale is pre-folded into Wq/bq.
    x = x_ref[...]
    qkv = jnp.dot(x, wqkv_ref[...],
                  preferred_element_type=jnp.float32) + bqkv_ref[...]

    bo = bo_ref[...]                                   # (1, E) f32
    for b in range(batch_block):                       # static unroll, Bt small
        r0 = b * S
        q = qkv[r0:r0 + S, 0 * E:1 * E]
        k = qkv[r0:r0 + S, 1 * E:2 * E]
        v = qkv[r0:r0 + S, 2 * E:3 * E]                # columns ordered (head, dim)

        # mean_h(Q_h K_h^T / sqrt(D)) == (Q K^T) * folded-scale  (heads partition E)
        scores = lax.dot_general(q.astype(cdt), k.astype(cdt),
                                 (((1,), (1,)), ((), ())),
                                 preferred_element_type=jnp.float32)   # (S, S)

        # --- max-stabilized softmax; normalization deferred to (S, E) ---------
        m = jnp.max(scores, axis=-1, keepdims=True)
        p = jnp.exp(scores - m)
        inv_l = pl.reciprocal(jnp.sum(p, axis=-1, keepdims=True), approx=True)

        # one matmul applies the shared attention weights to every head's V
        attn = jnp.dot(p.astype(cdt), v.astype(cdt),
                       preferred_element_type=jnp.float32) * inv_l     # (S, E)

        if H == 1:
            out_b = jnp.dot(attn.astype(cdt), wo_ref[...],
                            preferred_element_type=jnp.float32) + bo
            o_ref[r0:r0 + S, :] = out_b.astype(o_ref.dtype)
        else:
            # torch's flat (B,H,S,D).reshape(B,S,H*D) (mixes head & seq when
            # H > 1) reproduced with an MXU row-gather: G[c*Sg+r, :] = attn[r*H+c, :]
            G = jnp.dot(perm_ref[...], attn.astype(cdt),
                        preferred_element_type=jnp.float32)            # (S, E)
            Gl = G.astype(cdt)
            for h in range(H):
                # output rows [h*Sg, (h+1)*Sg):
                #   sum_c G[c-row-block, h-col-block] @ Wo[c-row-block]  (+ bo)
                acc = jnp.dot(Gl[0:Sg, h * D:(h + 1) * D], wo_ref[0:D, :],
                              preferred_element_type=jnp.float32)
                for c in range(1, H):
                    acc = acc + jnp.dot(
                        Gl[c * Sg:(c + 1) * Sg, h * D:(h + 1) * D],
                        wo_ref[c * D:(c + 1) * D, :],
                        preferred_element_type=jnp.float32)
                out_h = acc + bo                                        # (Sg, E)
                o_ref[r0 + h * Sg:r0 + (h + 1) * Sg, :] = out_h.astype(o_ref.dtype)


def prepare_params(wq_t, bq, wk_t, bk, wv_t, bv, wo_t, bo, *,
                   num_heads, seq_len, param_dtype=jnp.bfloat16):
    """One-time param prep: fuse/scale/cast weights, build the gather matrix."""
    E = wq_t.shape[0]
    H = num_heads
    assert E % H == 0
    D = E // H
    S = seq_len
    # TODO(synk): the row-gather permutation assumes num_heads | seq_len.
    assert S % H == 0, "kernel requires seq_len % num_heads == 0"
    Sg = S // H

    scale = 1.0 / (float(D) ** 0.5 * float(H))          # 1/sqrt(D) * mean-over-heads
    w_qkv = jnp.concatenate([wq_t * scale, wk_t, wv_t], axis=1).astype(param_dtype)
    b_qkv = jnp.concatenate([(bq * scale).reshape(1, E), bk.reshape(1, E),
                             bv.reshape(1, E)], axis=1).astype(jnp.float32)
    wo = wo_t.astype(param_dtype)
    bo2 = bo.reshape(1, E).astype(jnp.float32)

    # Constant one-hot matrix: perm[c*Sg + r, t] = 1 iff t == r*H + c
    rows = jnp.arange(S)
    src = (rows % Sg) * H + (rows // Sg)
    perm = (jnp.arange(S)[None, :] == src[:, None]).astype(param_dtype)

    return dict(w_qkv=w_qkv, b_qkv=b_qkv, wo=wo, bo=bo2, perm=perm,
                num_heads=H, seq_len=S)


def _pick_batch_block(batch, seq_len, target_rows=256):
    """Batches per grid step so the QKV matmul has ~target_rows rows of M."""
    bt = max(1, min(batch, target_rows // max(seq_len, 1)))
    while batch % bt:
        bt -= 1
    return bt


def _vmem_limit_bytes(bt, s, e, act_bytes):
    w = (e * 3 * e + e * e) * act_bytes * 2              # weights (double-buffered)
    b = 4 * e * 4 * 2                                    # biases (f32)
    xb = bt * s * e * act_bytes * 2                      # x block
    ob = bt * s * e * 4 * 2                              # out block
    pm = s * s * act_bytes * 2                           # perm matrix
    tmp = (bt * s * 3 * e + 2 * s * s + 4 * s * e) * 4   # qkv/scores/p/attn/G temps
    est = 2 * (w + b + xb + ob + pm + tmp)               # 2x headroom
    return int(min(max(est, 32 * 1024 * 1024), 64 * 1024 * 1024))


def axial_attention(x, params, *, batch_block=None,
                    activation_dtype=jnp.bfloat16, interpret=False):
    B, S, E = x.shape
    H = params["num_heads"]
    assert S == params["seq_len"]
    bt = batch_block if batch_block is not None else _pick_batch_block(B, S)
    assert B % bt == 0

    # Fold batch into the matmul M dimension (free XLA reshape outside kernel).
    x2 = x.reshape(B * S, E).astype(activation_dtype)
    out_dtype = x.dtype

    kernel = functools.partial(_axial_attention_kernel, num_heads=H,
                               seq_len=S, batch_block=bt)
    act_bytes = jnp.dtype(activation_dtype).itemsize

    out2 = pl.pallas_call(
        kernel,
        out_shape=jax.ShapeDtypeStruct((B * S, E), out_dtype),
        grid_spec=pltpu.PrefetchScalarGridSpec(
            num_scalar_prefetch=0,
            grid=(B // bt,),                              # batch-block axis
            in_specs=[
                pl.BlockSpec((bt * S, E), lambda i: (i, 0)),       # x rows
                # grid-invariant weights/biases (index_map (0,0) every step)
                pl.BlockSpec((E, 3 * E), lambda i: (0, 0)),
                pl.BlockSpec((1, 3 * E), lambda i: (0, 0)),
                pl.BlockSpec((E, E), lambda i: (0, 0)),
                pl.BlockSpec((1, E), lambda i: (0, 0)),
                pl.BlockSpec((S, S), lambda i: (0, 0)),            # one-hot gather
            ],
            out_specs=pl.BlockSpec((bt * S, E), lambda i: (i, 0)),
        ),
        compiler_params=pltpu.CompilerParams(
            dimension_semantics=("parallel",),            # megacore-shardable
            vmem_limit_bytes=_vmem_limit_bytes(bt, S, E, act_bytes)),
        interpret=interpret,
    )(x2, params["w_qkv"], params["b_qkv"], params["wo"], params["bo"],
      params["perm"])
    return out2.reshape(B, S, E)


def axial_attention_ref(x, wq_t, bq, wk_t, bk, wv_t, bv, wo_t, bo, *, num_heads):
    """Pure-JAX reference mirroring the PyTorch forward exactly (f32)."""
    B, S, E = x.shape
    H = num_heads
    D = E // H
    q = (x @ wq_t + bq).reshape(B, S, H, D).transpose(0, 2, 1, 3)
    k = (x @ wk_t + bk).reshape(B, S, H, D).transpose(0, 2, 1, 3)
    v = (x @ wv_t + bv).reshape(B, S, H, D).transpose(0, 2, 1, 3)
    scores = jnp.einsum("bhsd,bhtd->bhst", q, k) / (D ** 0.5)
    scores = scores.mean(axis=1)                    # axis=0 -> mean over heads
    w = jax.nn.softmax(scores, axis=-1)             # (B, S, S)
    attn = jnp.einsum("bst,bhtd->bhsd", w, v)       # (B, H, S, D)
    attn = attn.reshape(B, S, H * D)                # torch's flat reshape
    return attn @ wo_t + bo


if __name__ == "__main__":
    B, S, E, H = 2, 8, 32, 4   # embed_size=32, num_heads=4, head_dim=8, axis=0

    key = jax.random.PRNGKey(0)
    ks = jax.random.split(key, 9)
    bound = 1.0 / (E ** 0.5)

    def uni(k, shape):
        return jax.random.uniform(k, shape, jnp.float32, -bound, bound)

    x = jax.random.normal(ks[0], (B, S, E), jnp.float32)
    wq_t, bq = uni(ks[1], (E, E)), uni(ks[2], (E,))
    wk_t, bk = uni(ks[3], (E, E)), uni(ks[4], (E,))
    wv_t, bv = uni(ks[5], (E, E)), uni(ks[6], (E,))
    wo_t, bo = uni(ks[7], (E, E)), uni(ks[8], (E,))

    params = prepare_params(wq_t, bq, wk_t, bk, wv_t, bv, wo_t, bo,
                            num_heads=H, seq_len=S)
    out = axial_attention(x, params)
    out = jax.block_until_ready(out)

    ref = axial_attention_ref(x, wq_t, bq, wk_t, bk, wv_t, bv, wo_t, bo,
                              num_heads=H)
    assert out.shape == (B, S, E)
    max_err = float(jnp.max(jnp.abs(out - ref)))
    # bf16 activations/weights + approximate (EUP) softmax reciprocal -> loose tol;
    # a permutation/semantic bug would produce O(1) errors and still be caught.
    assert jnp.allclose(out, ref, atol=3e-2, rtol=3e-2), max_err

    print("KERNEL_OK")
</pallas_src>

<mosaic_0001>
module attributes {stable_mosaic.version = 11 : i64} {
  func.func @_axial_attention_kernel(%arg0: i32, %arg1: memref<16x32xbf16, #tpu.memory_space<vmem>>, %arg2: memref<32x96xbf16, #tpu.memory_space<vmem>>, %arg3: memref<1x96xf32, #tpu.memory_space<vmem>>, %arg4: memref<32x32xbf16, #tpu.memory_space<vmem>>, %arg5: memref<1x32xf32, #tpu.memory_space<vmem>>, %arg6: memref<8x8xbf16, #tpu.memory_space<vmem>>, %arg7: memref<16x32xf32, #tpu.memory_space<vmem>>) attributes {dimension_semantics = [#tpu.dimension_semantics<parallel>], iteration_bounds = array<i64: 1>, scalar_prefetch = 0 : i64, scratch_operands = 0 : i64, tpu.core_type = #tpu.core_type<tc>, window_params = [{transform_indices = @transform_0, window_bounds = array<i64: 16, 32>}, {pipeline_mode = #tpu.pipeline_mode<synchronous>, transform_indices = @transform_1, window_bounds = array<i64: 32, 96>}, {pipeline_mode = #tpu.pipeline_mode<synchronous>, transform_indices = @transform_2, window_bounds = array<i64: 1, 96>}, {pipeline_mode = #tpu.pipeline_mode<synchronous>, transform_indices = @transform_3, window_bounds = array<i64: 32, 32>}, {pipeline_mode = #tpu.pipeline_mode<synchronous>, transform_indices = @transform_4, window_bounds = array<i64: 1, 32>}, {pipeline_mode = #tpu.pipeline_mode<synchronous>, transform_indices = @transform_5, window_bounds = array<i64: 8, 8>}, {transform_indices = @transform_6, window_bounds = array<i64: 16, 32>}]} {
    %c0 = arith.constant 0 : index
    %c0_0 = arith.constant 0 : index
    %0 = vector.load %arg1[%c0, %c0_0] : memref<16x32xbf16, #tpu.memory_space<vmem>>, vector<16x32xbf16>
    %c0_1 = arith.constant 0 : index
    %c0_2 = arith.constant 0 : index
    %1 = vector.load %arg2[%c0_1, %c0_2] : memref<32x96xbf16, #tpu.memory_space<vmem>>, vector<32x96xbf16>
    %cst = arith.constant dense<0.000000e+00> : vector<16x96xf32>
    %2 = tpu.matmul %0, %1, %cst {dimension_numbers = #tpu.dot_dimension_numbers<[1], [0], [0], [1], [0, 0, 1, 1], [], []>} : vector<16x32xbf16>, vector<32x96xbf16>, vector<16x96xf32> -> vector<16x96xf32>
    %c0_3 = arith.constant 0 : index
    %c0_4 = arith.constant 0 : index
    %3 = vector.load %arg3[%c0_3, %c0_4] : memref<1x96xf32, #tpu.memory_space<vmem>>, vector<1x96xf32>
    %4 = vector.broadcast %3 : vector<1x96xf32> to vector<16x96xf32>
    %5 = arith.addf %2, %4 : vector<16x96xf32>
    %c0_5 = arith.constant 0 : index
    %c0_6 = arith.constant 0 : index
    %6 = vector.load %arg5[%c0_5, %c0_6] : memref<1x32xf32, #tpu.memory_space<vmem>>, vector<1x32xf32>
    %7 = vector.extract_strided_slice %5 {offsets = [0, 0], sizes = [8, 32], strides = [1, 1]} : vector<16x96xf32> to vector<8x32xf32>
    %8 = vector.extract_strided_slice %5 {offsets = [0, 32], sizes = [8, 32], strides = [1, 1]} : vector<16x96xf32> to vector<8x32xf32>
    %9 = vector.extract_strided_slice %5 {offsets = [0, 64], sizes = [8, 32], strides = [1, 1]} : vector<16x96xf32> to vector<8x32xf32>
    %10 = arith.truncf %7 : vector<8x32xf32> to vector<8x32xbf16>
    %11 = arith.truncf %8 : vector<8x32xf32> to vector<8x32xbf16>
    %cst_7 = arith.constant dense<0.000000e+00> : vector<8x8xf32>
    %12 = tpu.matmul %10, %11, %cst_7 {dimension_numbers = #tpu.dot_dimension_numbers<[1], [1], [0], [0], [0, 0, 1, 0], [], []>} : vector<8x32xbf16>, vector<8x32xbf16>, vector<8x8xf32> -> vector<8x8xf32>
    %cst_8 = arith.constant dense<0xFF800000> : vector<8xf32>
    %13 = vector.multi_reduction <maximumf>, %12, %cst_8 [1] : vector<8x8xf32> to vector<8xf32>
    %14 = vector.shape_cast %13 : vector<8xf32> to vector<8x1xf32>
    %15 = vector.broadcast %14 : vector<8x1xf32> to vector<8x8xf32>
    %16 = arith.subf %12, %15 : vector<8x8xf32>
    %17 = math.exp %16 : vector<8x8xf32>
    %cst_9 = arith.constant dense<0.000000e+00> : vector<8xf32>
    %18 = vector.multi_reduction <add>, %17, %cst_9 [1] : vector<8x8xf32> to vector<8xf32>
    %19 = vector.shape_cast %18 : vector<8xf32> to vector<8x1xf32>
    %20 = tpu.reciprocal %19 {approx = true} : vector<8x1xf32> -> vector<8x1xf32>
    %21 = arith.truncf %17 : vector<8x8xf32> to vector<8x8xbf16>
    %22 = arith.truncf %9 : vector<8x32xf32> to vector<8x32xbf16>
    %cst_10 = arith.constant dense<0.000000e+00> : vector<8x32xf32>
    %23 = tpu.matmul %21, %22, %cst_10 {dimension_numbers = #tpu.dot_dimension_numbers<[1], [0], [0], [1], [0, 0, 1, 1], [], []>} : vector<8x8xbf16>, vector<8x32xbf16>, vector<8x32xf32> -> vector<8x32xf32>
    %24 = vector.broadcast %20 : vector<8x1xf32> to vector<8x32xf32>
    %25 = arith.mulf %23, %24 : vector<8x32xf32>
    %c0_11 = arith.constant 0 : index
    %c0_12 = arith.constant 0 : index
    %26 = vector.load %arg6[%c0_11, %c0_12] : memref<8x8xbf16, #tpu.memory_space<vmem>>, vector<8x8xbf16>
    %27 = arith.truncf %25 : vector<8x32xf32> to vector<8x32xbf16>
    %cst_13 = arith.constant dense<0.000000e+00> : vector<8x32xf32>
    %28 = tpu.matmul %26, %27, %cst_13 {dimension_numbers = #tpu.dot_dimension_numbers<[1], [0], [0], [1], [0, 0, 1, 1], [], []>} : vector<8x8xbf16>, vector<8x32xbf16>, vector<8x32xf32> -> vector<8x32xf32>
    %29 = arith.truncf %28 : vector<8x32xf32> to vector<8x32xbf16>
    %30 = vector.extract_strided_slice %29 {offsets = [0, 0], sizes = [2, 8], strides = [1, 1]} : vector<8x32xbf16> to vector<2x8xbf16>
    %c0_14 = arith.constant 0 : index
    %c0_15 = arith.constant 0 : index
    %31 = vector.load %arg4[%c0_14, %c0_15] : memref<32x32xbf16, #tpu.memory_space<vmem>>, vector<8x32xbf16>
    %cst_16 = arith.constant dense<0.000000e+00> : vector<2x32xf32>
    %32 = tpu.matmul %30, %31, %cst_16 {dimension_numbers = #tpu.dot_dimension_numbers<[1], [0], [0], [1], [0, 0, 1, 1], [], []>} : vector<2x8xbf16>, vector<8x32xbf16>, vector<2x32xf32> -> vector<2x32xf32>
    %33 = vector.extract_strided_slice %29 {offsets = [2, 0], sizes = [2, 8], strides = [1, 1]} : vector<8x32xbf16> to vector<2x8xbf16>
    %c8 = arith.constant 8 : index
    %c0_17 = arith.constant 0 : index
    %34 = vector.load %arg4[%c8, %c0_17] : memref<32x32xbf16, #tpu.memory_space<vmem>>, vector<8x32xbf16>
    %cst_18 = arith.constant dense<0.000000e+00> : vector<2x32xf32>
    %35 = tpu.matmul %33, %34, %cst_18 {dimension_numbers = #tpu.dot_dimension_numbers<[1], [0], [0], [1], [0, 0, 1, 1], [], []>} : vector<2x8xbf16>, vector<8x32xbf16>, vector<2x32xf32> -> vector<2x32xf32>
    %36 = arith.addf %32, %35 : vector<2x32xf32>
    %37 = vector.extract_strided_slice %29 {offsets = [4, 0], sizes = [2, 8], strides = [1, 1]} : vector<8x32xbf16> to vector<2x8xbf16>
    %c16 = arith.constant 16 : index
    %c0_19 = arith.constant 0 : index
    %38 = vector.load %arg4[%c16, %c0_19] : memref<32x32xbf16, #tpu.memory_space<vmem>>, vector<8x32xbf16>
    %cst_20 = arith.constant dense<0.000000e+00> : vector<2x32xf32>
    %39 = tpu.matmul %37, %38, %cst_20 {dimension_numbers = #tpu.dot_dimension_numbers<[1], [0], [0], [1], [0, 0, 1, 1], [], []>} : vector<2x8xbf16>, vector<8x32xbf16>, vector<2x32xf32> -> vector<2x32xf32>
    %40 = arith.addf %36, %39 : vector<2x32xf32>
    %41 = vector.extract_strided_slice %29 {offsets = [6, 0], sizes = [2, 8], strides = [1, 1]} : vector<8x32xbf16> to vector<2x8xbf16>
    %c24 = arith.constant 24 : index
    %c0_21 = arith.constant 0 : index
    %42 = vector.load %arg4[%c24, %c0_21] : memref<32x32xbf16, #tpu.memory_space<vmem>>, vector<8x32xbf16>
    %cst_22 = arith.constant dense<0.000000e+00> : vector<2x32xf32>
    %43 = tpu.matmul %41, %42, %cst_22 {dimension_numbers = #tpu.dot_dimension_numbers<[1], [0], [0], [1], [0, 0, 1, 1], [], []>} : vector<2x8xbf16>, vector<8x32xbf16>, vector<2x32xf32> -> vector<2x32xf32>
    %44 = arith.addf %40, %43 : vector<2x32xf32>
    %45 = vector.broadcast %6 : vector<1x32xf32> to vector<2x32xf32>
    %46 = arith.addf %44, %45 : vector<2x32xf32>
    %c0_23 = arith.constant 0 : index
    %c0_24 = arith.constant 0 : index
    %47 = vector.load %arg7[%c0_23, %c0_24] : memref<16x32xf32, #tpu.memory_space<vmem>>, vector<2x32xf32>
    tpu.vector_store %arg7[%c0_23, %c0_24], %46 {strides = array<i32>} : memref<16x32xf32, #tpu.memory_space<vmem>>, vector<2x32xf32>,
    %48 = vector.extract_strided_slice %29 {offsets = [0, 8], sizes = [2, 8], strides = [1, 1]} : vector<8x32xbf16> to vector<2x8xbf16>
    %c0_25 = arith.constant 0 : index
    %c0_26 = arith.constant 0 : index
    %49 = vector.load %arg4[%c0_25, %c0_26] : memref<32x32xbf16, #tpu.memory_space<vmem>>, vector<8x32xbf16>
    %cst_27 = arith.constant dense<0.000000e+00> : vector<2x32xf32>
    %50 = tpu.matmul %48, %49, %cst_27 {dimension_numbers = #tpu.dot_dimension_numbers<[1], [0], [0], [1], [0, 0, 1, 1], [], []>} : vector<2x8xbf16>, vector<8x32xbf16>, vector<2x32xf32> -> vector<2x32xf32>
    %51 = vector.extract_strided_slice %29 {offsets = [2, 8], sizes = [2, 8], strides = [1, 1]} : vector<8x32xbf16> to vector<2x8xbf16>
    %c8_28 = arith.constant 8 : index
    %c0_29 = arith.constant 0 : index
    %52 = vector.load %arg4[%c8_28, %c0_29] : memref<32x32xbf16, #tpu.memory_space<vmem>>, vector<8x32xbf16>
    %cst_30 = arith.constant dense<0.000000e+00> : vector<2x32xf32>
    %53 = tpu.matmul %51, %52, %cst_30 {dimension_numbers = #tpu.dot_dimension_numbers<[1], [0], [0], [1], [0, 0, 1, 1], [], []>} : vector<2x8xbf16>, vector<8x32xbf16>, vector<2x32xf32> -> vector<2x32xf32>
    %54 = arith.addf %50, %53 : vector<2x32xf32>
    %55 = vector.extract_strided_slice %29 {offsets = [4, 8], sizes = [2, 8], strides = [1, 1]} : vector<8x32xbf16> to vector<2x8xbf16>
    %c16_31 = arith.constant 16 : index
    %c0_32 = arith.constant 0 : index
    %56 = vector.load %arg4[%c16_31, %c0_32] : memref<32x32xbf16, #tpu.memory_space<vmem>>, vector<8x32xbf16>
    %cst_33 = arith.constant dense<0.000000e+00> : vector<2x32xf32>
    %57 = tpu.matmul %55, %56, %cst_33 {dimension_numbers = #tpu.dot_dimension_numbers<[1], [0], [0], [1], [0, 0, 1, 1], [], []>} : vector<2x8xbf16>, vector<8x32xbf16>, vector<2x32xf32> -> vector<2x32xf32>
    %58 = arith.addf %54, %57 : vector<2x32xf32>
    %59 = vector.extract_strided_slice %29 {offsets = [6, 8], sizes = [2, 8], strides = [1, 1]} : vector<8x32xbf16> to vector<2x8xbf16>
    %c24_34 = arith.constant 24 : index
    %c0_35 = arith.constant 0 : index
    %60 = vector.load %arg4[%c24_34, %c0_35] : memref<32x32xbf16, #tpu.memory_space<vmem>>, vector<8x32xbf16>
    %cst_36 = arith.constant dense<0.000000e+00> : vector<2x32xf32>
    %61 = tpu.matmul %59, %60, %cst_36 {dimension_numbers = #tpu.dot_dimension_numbers<[1], [0], [0], [1], [0, 0, 1, 1], [], []>} : vector<2x8xbf16>, vector<8x32xbf16>, vector<2x32xf32> -> vector<2x32xf32>
    %62 = arith.addf %58, %61 : vector<2x32xf32>
    %63 = vector.broadcast %6 : vector<1x32xf32> to vector<2x32xf32>
    %64 = arith.addf %62, %63 : vector<2x32xf32>
    %c2 = arith.constant 2 : index
    %c0_37 = arith.constant 0 : index
    %65 = vector.load %arg7[%c2, %c0_37] : memref<16x32xf32, #tpu.memory_space<vmem>>, vector<2x32xf32>
    tpu.vector_store %arg7[%c2, %c0_37], %64 {strides = array<i32>} : memref<16x32xf32, #tpu.memory_space<vmem>>, vector<2x32xf32>,
    %66 = vector.extract_strided_slice %29 {offsets = [0, 16], sizes = [2, 8], strides = [1, 1]} : vector<8x32xbf16> to vector<2x8xbf16>
    %c0_38 = arith.constant 0 : index
    %c0_39 = arith.constant 0 : index
    %67 = vector.load %arg4[%c0_38, %c0_39] : memref<32x32xbf16, #tpu.memory_space<vmem>>, vector<8x32xbf16>
    %cst_40 = arith.constant dense<0.000000e+00> : vector<2x32xf32>
    %68 = tpu.matmul %66, %67, %cst_40 {dimension_numbers = #tpu.dot_dimension_numbers<[1], [0], [0], [1], [0, 0, 1, 1], [], []>} : vector<2x8xbf16>, vector<8x32xbf16>, vector<2x32xf32> -> vector<2x32xf32>
    %69 = vector.extract_strided_slice %29 {offsets = [2, 16], sizes = [2, 8], strides = [1, 1]} : vector<8x32xbf16> to vector<2x8xbf16>
    %c8_41 = arith.constant 8 : index
    %c0_42 = arith.constant 0 : index
    %70 = vector.load %arg4[%c8_41, %c0_42] : memref<32x32xbf16, #tpu.memory_space<vmem>>, vector<8x32xbf16>
    %cst_43 = arith.constant dense<0.000000e+00> : vector<2x32xf32>
    %71 = tpu.matmul %69, %70, %cst_43 {dimension_numbers = #tpu.dot_dimension_numbers<[1], [0], [0], [1], [0, 0, 1, 1], [], []>} : vector<2x8xbf16>, vector<8x32xbf16>, vector<2x32xf32> -> vector<2x32xf32>
    %72 = arith.addf %68, %71 : vector<2x32xf32>
    %73 = vector.extract_strided_slice %29 {offsets = [4, 16], sizes = [2, 8], strides = [1, 1]} : vector<8x32xbf16> to vector<2x8xbf16>
    %c16_44 = arith.constant 16 : index
    %c0_45 = arith.constant 0 : index
    %74 = vector.load %arg4[%c16_44, %c0_45] : memref<32x32xbf16, #tpu.memory_space<vmem>>, vector<8x32xbf16>
    %cst_46 = arith.constant dense<0.000000e+00> : vector<2x32xf32>
    %75 = tpu.matmul %73, %74, %cst_46 {dimension_numbers = #tpu.dot_dimension_numbers<[1], [0], [0], [1], [0, 0, 1, 1], [], []>} : vector<2x8xbf16>, vector<8x32xbf16>, vector<2x32xf32> -> vector<2x32xf32>
    %76 = arith.addf %72, %75 : vector<2x32xf32>
    %77 = vector.extract_strided_slice %29 {offsets = [6, 16], sizes = [2, 8], strides = [1, 1]} : vector<8x32xbf16> to vector<2x8xbf16>
    %c24_47 = arith.constant 24 : index
    %c0_48 = arith.constant 0 : index
    %78 = vector.load %arg4[%c24_47, %c0_48] : memref<32x32xbf16, #tpu.memory_space<vmem>>, vector<8x32xbf16>
    %cst_49 = arith.constant dense<0.000000e+00> : vector<2x32xf32>
    %79 = tpu.matmul %77, %78, %cst_49 {dimension_numbers = #tpu.dot_dimension_numbers<[1], [0], [0], [1], [0, 0, 1, 1], [], []>} : vector<2x8xbf16>, vector<8x32xbf16>, vector<2x32xf32> -> vector<2x32xf32>
    %80 = arith.addf %76, %79 : vector<2x32xf32>
    %81 = vector.broadcast %6 : vector<1x32xf32> to vector<2x32xf32>
    %82 = arith.addf %80, %81 : vector<2x32xf32>
    %c4 = arith.constant 4 : index
    %c0_50 = arith.constant 0 : index
    %83 = vector.load %arg7[%c4, %c0_50] : memref<16x32xf32, #tpu.memory_space<vmem>>, vector<2x32xf32>
    tpu.vector_store %arg7[%c4, %c0_50], %82 {strides = array<i32>} : memref<16x32xf32, #tpu.memory_space<vmem>>, vector<2x32xf32>,
    %84 = vector.extract_strided_slice %29 {offsets = [0, 24], sizes = [2, 8], strides = [1, 1]} : vector<8x32xbf16> to vector<2x8xbf16>
    %c0_51 = arith.constant 0 : index
    %c0_52 = arith.constant 0 : index
    %85 = vector.load %arg4[%c0_51, %c0_52] : memref<32x32xbf16, #tpu.memory_space<vmem>>, vector<8x32xbf16>
    %cst_53 = arith.constant dense<0.000000e+00> : vector<2x32xf32>
    %86 = tpu.matmul %84, %85, %cst_53 {dimension_numbers = #tpu.dot_dimension_numbers<[1], [0], [0], [1], [0, 0, 1, 1], [], []>} : vector<2x8xbf16>, vector<8x32xbf16>, vector<2x32xf32> -> vector<2x32xf32>
    %87 = vector.extract_strided_slice %29 {offsets = [2, 24], sizes = [2, 8], strides = [1, 1]} : vector<8x32xbf16> to vector<2x8xbf16>
    %c8_54 = arith.constant 8 : index
    %c0_55 = arith.constant 0 : index
    %88 = vector.load %arg4[%c8_54, %c0_55] : memref<32x32xbf16, #tpu.memory_space<vmem>>, vector<8x32xbf16>
    %cst_56 = arith.constant dense<0.000000e+00> : vector<2x32xf32>
    %89 = tpu.matmul %87, %88, %cst_56 {dimension_numbers = #tpu.dot_dimension_numbers<[1], [0], [0], [1], [0, 0, 1, 1], [], []>} : vector<2x8xbf16>, vector<8x32xbf16>, vector<2x32xf32> -> vector<2x32xf32>
    %90 = arith.addf %86, %89 : vector<2x32xf32>
    %91 = vector.extract_strided_slice %29 {offsets = [4, 24], sizes = [2, 8], strides = [1, 1]} : vector<8x32xbf16> to vector<2x8xbf16>
    %c16_57 = arith.constant 16 : index
    %c0_58 = arith.constant 0 : index
    %92 = vector.load %arg4[%c16_57, %c0_58] : memref<32x32xbf16, #tpu.memory_space<vmem>>, vector<8x32xbf16>
    %cst_59 = arith.constant dense<0.000000e+00> : vector<2x32xf32>
    %93 = tpu.matmul %91, %92, %cst_59 {dimension_numbers = #tpu.dot_dimension_numbers<[1], [0], [0], [1], [0, 0, 1, 1], [], []>} : vector<2x8xbf16>, vector<8x32xbf16>, vector<2x32xf32> -> vector<2x32xf32>
    %94 = arith.addf %90, %93 : vector<2x32xf32>
    %95 = vector.extract_strided_slice %29 {offsets = [6, 24], sizes = [2, 8], strides = [1, 1]} : vector<8x32xbf16> to vector<2x8xbf16>
    %c24_60 = arith.constant 24 : index
    %c0_61 = arith.constant 0 : index
    %96 = vector.load %arg4[%c24_60, %c0_61] : memref<32x32xbf16, #tpu.memory_space<vmem>>, vector<8x32xbf16>
    %cst_62 = arith.constant dense<0.000000e+00> : vector<2x32xf32>
    %97 = tpu.matmul %95, %96, %cst_62 {dimension_numbers = #tpu.dot_dimension_numbers<[1], [0], [0], [1], [0, 0, 1, 1], [], []>} : vector<2x8xbf16>, vector<8x32xbf16>, vector<2x32xf32> -> vector<2x32xf32>
    %98 = arith.addf %94, %97 : vector<2x32xf32>
    %99 = vector.broadcast %6 : vector<1x32xf32> to vector<2x32xf32>
    %100 = arith.addf %98, %99 : vector<2x32xf32>
    %c6 = arith.constant 6 : index
    %c0_63 = arith.constant 0 : index
    %101 = vector.load %arg7[%c6, %c0_63] : memref<16x32xf32, #tpu.memory_space<vmem>>, vector<2x32xf32>
    tpu.vector_store %arg7[%c6, %c0_63], %100 {strides = array<i32>} : memref<16x32xf32, #tpu.memory_space<vmem>>, vector<2x32xf32>,
    %102 = vector.extract_strided_slice %5 {offsets = [8, 0], sizes = [8, 32], strides = [1, 1]} : vector<16x96xf32> to vector<8x32xf32>
    %103 = vector.extract_strided_slice %5 {offsets = [8, 32], sizes = [8, 32], strides = [1, 1]} : vector<16x96xf32> to vector<8x32xf32>
    %104 = vector.extract_strided_slice %5 {offsets = [8, 64], sizes = [8, 32], strides = [1, 1]} : vector<16x96xf32> to vector<8x32xf32>
    %105 = arith.truncf %102 : vector<8x32xf32> to vector<8x32xbf16>
    %106 = arith.truncf %103 : vector<8x32xf32> to vector<8x32xbf16>
    %cst_64 = arith.constant dense<0.000000e+00> : vector<8x8xf32>
    %107 = tpu.matmul %105, %106, %cst_64 {dimension_numbers = #tpu.dot_dimension_numbers<[1], [1], [0], [0], [0, 0, 1, 0], [], []>} : vector<8x32xbf16>, vector<8x32xbf16>, vector<8x8xf32> -> vector<8x8xf32>
    %cst_65 = arith.constant dense<0xFF800000> : vector<8xf32>
    %108 = vector.multi_reduction <maximumf>, %107, %cst_65 [1] : vector<8x8xf32> to vector<8xf32>
    %109 = vector.shape_cast %108 : vector<8xf32> to vector<8x1xf32>
    %110 = vector.broadcast %109 : vector<8x1xf32> to vector<8x8xf32>
    %111 = arith.subf %107, %110 : vector<8x8xf32>
    %112 = math.exp %111 : vector<8x8xf32>
    %cst_66 = arith.constant dense<0.000000e+00> : vector<8xf32>
    %113 = vector.multi_reduction <add>, %112, %cst_66 [1] : vector<8x8xf32> to vector<8xf32>
    %114 = vector.shape_cast %113 : vector<8xf32> to vector<8x1xf32>
    %115 = tpu.reciprocal %114 {approx = true} : vector<8x1xf32> -> vector<8x1xf32>
    %116 = arith.truncf %112 : vector<8x8xf32> to vector<8x8xbf16>
    %117 = arith.truncf %104 : vector<8x32xf32> to vector<8x32xbf16>
    %cst_67 = arith.constant dense<0.000000e+00> : vector<8x32xf32>
    %118 = tpu.matmul %116, %117, %cst_67 {dimension_numbers = #tpu.dot_dimension_numbers<[1], [0], [0], [1], [0, 0, 1, 1], [], []>} : vector<8x8xbf16>, vector<8x32xbf16>, vector<8x32xf32> -> vector<8x32xf32>
    %119 = vector.broadcast %115 : vector<8x1xf32> to vector<8x32xf32>
    %120 = arith.mulf %118, %119 : vector<8x32xf32>
    %c0_68 = arith.constant 0 : index
    %c0_69 = arith.constant 0 : index
    %121 = vector.load %arg6[%c0_68, %c0_69] : memref<8x8xbf16, #tpu.memory_space<vmem>>, vector<8x8xbf16>
    %122 = arith.truncf %120 : vector<8x32xf32> to vector<8x32xbf16>
    %cst_70 = arith.constant dense<0.000000e+00> : vector<8x32xf32>
    %123 = tpu.matmul %121, %122, %cst_70 {dimension_numbers = #tpu.dot_dimension_numbers<[1], [0], [0], [1], [0, 0, 1, 1], [], []>} : vector<8x8xbf16>, vector<8x32xbf16>, vector<8x32xf32> -> vector<8x32xf32>
    %124 = arith.truncf %123 : vector<8x32xf32> to vector<8x32xbf16>
    %125 = vector.extract_strided_slice %124 {offsets = [0, 0], sizes = [2, 8], strides = [1, 1]} : vector<8x32xbf16> to vector<2x8xbf16>
    %c0_71 = arith.constant 0 : index
    %c0_72 = arith.constant 0 : index
    %126 = vector.load %arg4[%c0_71, %c0_72] : memref<32x32xbf16, #tpu.memory_space<vmem>>, vector<8x32xbf16>
    %cst_73 = arith.constant dense<0.000000e+00> : vector<2x32xf32>
    %127 = tpu.matmul %125, %126, %cst_73 {dimension_numbers = #tpu.dot_dimension_numbers<[1], [0], [0], [1], [0, 0, 1, 1], [], []>} : vector<2x8xbf16>, vector<8x32xbf16>, vector<2x32xf32> -> vector<2x32xf32>
    %128 = vector.extract_strided_slice %124 {offsets = [2, 0], sizes = [2, 8], strides = [1, 1]} : vector<8x32xbf16> to vector<2x8xbf16>
    %c8_74 = arith.constant 8 : index
    %c0_75 = arith.constant 0 : index
    %129 = vector.load %arg4[%c8_74, %c0_75] : memref<32x32xbf16, #tpu.memory_space<vmem>>, vector<8x32xbf16>
    %cst_76 = arith.constant dense<0.000000e+00> : vector<2x32xf32>
    %130 = tpu.matmul %128, %129, %cst_76 {dimension_numbers = #tpu.dot_dimension_numbers<[1], [0], [0], [1], [0, 0, 1, 1], [], []>} : vector<2x8xbf16>, vector<8x32xbf16>, vector<2x32xf32> -> vector<2x32xf32>
    %131 = arith.addf %127, %130 : vector<2x32xf32>
    %132 = vector.extract_strided_slice %124 {offsets = [4, 0], sizes = [2, 8], strides = [1, 1]} : vector<8x32xbf16> to vector<2x8xbf16>
    %c16_77 = arith.constant 16 : index
    %c0_78 = arith.constant 0 : index
    %133 = vector.load %arg4[%c16_77, %c0_78] : memref<32x32xbf16, #tpu.memory_space<vmem>>, vector<8x32xbf16>
    %cst_79 = arith.constant dense<0.000000e+00> : vector<2x32xf32>
    %134 = tpu.matmul %132, %133, %cst_79 {dimension_numbers = #tpu.dot_dimension_numbers<[1], [0], [0], [1], [0, 0, 1, 1], [], []>} : vector<2x8xbf16>, vector<8x32xbf16>, vector<2x32xf32> -> vector<2x32xf32>
    %135 = arith.addf %131, %134 : vector<2x32xf32>
    %136 = vector.extract_strided_slice %124 {offsets = [6, 0], sizes = [2, 8], strides = [1, 1]} : vector<8x32xbf16> to vector<2x8xbf16>
    %c24_80 = arith.constant 24 : index
    %c0_81 = arith.constant 0 : index
    %137 = vector.load %arg4[%c24_80, %c0_81] : memref<32x32xbf16, #tpu.memory_space<vmem>>, vector<8x32xbf16>
    %cst_82 = arith.constant dense<0.000000e+00> : vector<2x32xf32>
    %138 = tpu.matmul %136, %137, %cst_82 {dimension_numbers = #tpu.dot_dimension_numbers<[1], [0], [0], [1], [0, 0, 1, 1], [], []>} : vector<2x8xbf16>, vector<8x32xbf16>, vector<2x32xf32> -> vector<2x32xf32>
    %139 = arith.addf %135, %138 : vector<2x32xf32>
    %140 = vector.broadcast %6 : vector<1x32xf32> to vector<2x32xf32>
    %141 = arith.addf %139, %140 : vector<2x32xf32>
    %c8_83 = arith.constant 8 : index
    %c0_84 = arith.constant 0 : index
    %142 = vector.load %arg7[%c8_83, %c0_84] : memref<16x32xf32, #tpu.memory_space<vmem>>, vector<2x32xf32>
    tpu.vector_store %arg7[%c8_83, %c0_84], %141 {strides = array<i32>} : memref<16x32xf32, #tpu.memory_space<vmem>>, vector<2x32xf32>,
    %143 = vector.extract_strided_slice %124 {offsets = [0, 8], sizes = [2, 8], strides = [1, 1]} : vector<8x32xbf16> to vector<2x8xbf16>
    %c0_85 = arith.constant 0 : index
    %c0_86 = arith.constant 0 : index
    %144 = vector.load %arg4[%c0_85, %c0_86] : memref<32x32xbf16, #tpu.memory_space<vmem>>, vector<8x32xbf16>
    %cst_87 = arith.constant dense<0.000000e+00> : vector<2x32xf32>
    %145 = tpu.matmul %143, %144, %cst_87 {dimension_numbers = #tpu.dot_dimension_numbers<[1], [0], [0], [1], [0, 0, 1, 1], [], []>} : vector<2x8xbf16>, vector<8x32xbf16>, vector<2x32xf32> -> vector<2x32xf32>
    %146 = vector.extract_strided_slice %124 {offsets = [2, 8], sizes = [2, 8], strides = [1, 1]} : vector<8x32xbf16> to vector<2x8xbf16>
    %c8_88 = arith.constant 8 : index
    %c0_89 = arith.constant 0 : index
    %147 = vector.load %arg4[%c8_88, %c0_89] : memref<32x32xbf16, #tpu.memory_space<vmem>>, vector<8x32xbf16>
    %cst_90 = arith.constant dense<0.000000e+00> : vector<2x32xf32>
    %148 = tpu.matmul %146, %147, %cst_90 {dimension_numbers = #tpu.dot_dimension_numbers<[1], [0], [0], [1], [0, 0, 1, 1], [], []>} : vector<2x8xbf16>, vector<8x32xbf16>, vector<2x32xf32> -> vector<2x32xf32>
    %149 = arith.addf %145, %148 : vector<2x32xf32>
    %150 = vector.extract_strided_slice %124 {offsets = [4, 8], sizes = [2, 8], strides = [1, 1]} : vector<8x32xbf16> to vector<2x8xbf16>
    %c16_91 = arith.constant 16 : index
    %c0_92 = arith.constant 0 : index
    %151 = vector.load %arg4[%c16_91, %c0_92] : memref<32x32xbf16, #tpu.memory_space<vmem>>, vector<8x32xbf16>
    %cst_93 = arith.constant dense<0.000000e+00> : vector<2x32xf32>
    %152 = tpu.matmul %150, %151, %cst_93 {dimension_numbers = #tpu.dot_dimension_numbers<[1], [0], [0], [1], [0, 0, 1, 1], [], []>} : vector<2x8xbf16>, vector<8x32xbf16>, vector<2x32xf32> -> vector<2x32xf32>
    %153 = arith.addf %149, %152 : vector<2x32xf32>
    %154 = vector.extract_strided_slice %124 {offsets = [6, 8], sizes = [2, 8], strides = [1, 1]} : vector<8x32xbf16> to vector<2x8xbf16>
    %c24_94 = arith.constant 24 : index
    %c0_95 = arith.constant 0 : index
    %155 = vector.load %arg4[%c24_94, %c0_95] : memref<32x32xbf16, #tpu.memory_space<vmem>>, vector<8x32xbf16>
    %cst_96 = arith.constant dense<0.000000e+00> : vector<2x32xf32>
    %156 = tpu.matmul %154, %155, %cst_96 {dimension_numbers = #tpu.dot_dimension_numbers<[1], [0], [0], [1], [0, 0, 1, 1], [], []>} : vector<2x8xbf16>, vector<8x32xbf16>, vector<2x32xf32> -> vector<2x32xf32>
    %157 = arith.addf %153, %156 : vector<2x32xf32>
    %158 = vector.broadcast %6 : vector<1x32xf32> to vector<2x32xf32>
    %159 = arith.addf %157, %158 : vector<2x32xf32>
    %c10 = arith.constant 10 : index
    %c0_97 = arith.constant 0 : index
    %160 = vector.load %arg7[%c10, %c0_97] : memref<16x32xf32, #tpu.memory_space<vmem>>, vector<2x32xf32>
    tpu.vector_store %arg7[%c10, %c0_97], %159 {strides = array<i32>} : memref<16x32xf32, #tpu.memory_space<vmem>>, vector<2x32xf32>,
    %161 = vector.extract_strided_slice %124 {offsets = [0, 16], sizes = [2, 8], strides = [1, 1]} : vector<8x32xbf16> to vector<2x8xbf16>
    %c0_98 = arith.constant 0 : index
    %c0_99 = arith.constant 0 : index
    %162 = vector.load %arg4[%c0_98, %c0_99] : memref<32x32xbf16, #tpu.memory_space<vmem>>, vector<8x32xbf16>
    %cst_100 = arith.constant dense<0.000000e+00> : vector<2x32xf32>
    %163 = tpu.matmul %161, %162, %cst_100 {dimension_numbers = #tpu.dot_dimension_numbers<[1], [0], [0], [1], [0, 0, 1, 1], [], []>} : vector<2x8xbf16>, vector<8x32xbf16>, vector<2x32xf32> -> vector<2x32xf32>
    %164 = vector.extract_strided_slice %124 {offsets = [2, 16], sizes = [2, 8], strides = [1, 1]} : vector<8x32xbf16> to vector<2x8xbf16>
    %c8_101 = arith.constant 8 : index
    %c0_102 = arith.constant 0 : index
    %165 = vector.load %arg4[%c8_101, %c0_102] : memref<32x32xbf16, #tpu.memory_space<vmem>>, vector<8x32xbf16>
    %cst_103 = arith.constant dense<0.000000e+00> : vector<2x32xf32>
    %166 = tpu.matmul %164, %165, %cst_103 {dimension_numbers = #tpu.dot_dimension_numbers<[1], [0], [0], [1], [0, 0, 1, 1], [], []>} : vector<2x8xbf16>, vector<8x32xbf16>, vector<2x32xf32> -> vector<2x32xf32>
    %167 = arith.addf %163, %166 : vector<2x32xf32>
    %168 = vector.extract_strided_slice %124 {offsets = [4, 16], sizes = [2, 8], strides = [1, 1]} : vector<8x32xbf16> to vector<2x8xbf16>
    %c16_104 = arith.constant 16 : index
    %c0_105 = arith.constant 0 : index
    %169 = vector.load %arg4[%c16_104, %c0_105] : memref<32x32xbf16, #tpu.memory_space<vmem>>, vector<8x32xbf16>
    %cst_106 = arith.constant dense<0.000000e+00> : vector<2x32xf32>
    %170 = tpu.matmul %168, %169, %cst_106 {dimension_numbers = #tpu.dot_dimension_numbers<[1], [0], [0], [1], [0, 0, 1, 1], [], []>} : vector<2x8xbf16>, vector<8x32xbf16>, vector<2x32xf32> -> vector<2x32xf32>
    %171 = arith.addf %167, %170 : vector<2x32xf32>
    %172 = vector.extract_strided_slice %124 {offsets = [6, 16], sizes = [2, 8], strides = [1, 1]} : vector<8x32xbf16> to vector<2x8xbf16>
    %c24_107 = arith.constant 24 : index
    %c0_108 = arith.constant 0 : index
    %173 = vector.load %arg4[%c24_107, %c0_108] : memref<32x32xbf16, #tpu.memory_space<vmem>>, vector<8x32xbf16>
    %cst_109 = arith.constant dense<0.000000e+00> : vector<2x32xf32>
    %174 = tpu.matmul %172, %173, %cst_109 {dimension_numbers = #tpu.dot_dimension_numbers<[1], [0], [0], [1], [0, 0, 1, 1], [], []>} : vector<2x8xbf16>, vector<8x32xbf16>, vector<2x32xf32> -> vector<2x32xf32>
    %175 = arith.addf %171, %174 : vector<2x32xf32>
    %176 = vector.broadcast %6 : vector<1x32xf32> to vector<2x32xf32>
    %177 = arith.addf %175, %176 : vector<2x32xf32>
    %c12 = arith.constant 12 : index
    %c0_110 = arith.constant 0 : index
    %178 = vector.load %arg7[%c12, %c0_110] : memref<16x32xf32, #tpu.memory_space<vmem>>, vector<2x32xf32>
    tpu.vector_store %arg7[%c12, %c0_110], %177 {strides = array<i32>} : memref<16x32xf32, #tpu.memory_space<vmem>>, vector<2x32xf32>,
    %179 = vector.extract_strided_slice %124 {offsets = [0, 24], sizes = [2, 8], strides = [1, 1]} : vector<8x32xbf16> to vector<2x8xbf16>
    %c0_111 = arith.constant 0 : index
    %c0_112 = arith.constant 0 : index
    %180 = vector.load %arg4[%c0_111, %c0_112] : memref<32x32xbf16, #tpu.memory_space<vmem>>, vector<8x32xbf16>
    %cst_113 = arith.constant dense<0.000000e+00> : vector<2x32xf32>
    %181 = tpu.matmul %179, %180, %cst_113 {dimension_numbers = #tpu.dot_dimension_numbers<[1], [0], [0], [1], [0, 0, 1, 1], [], []>} : vector<2x8xbf16>, vector<8x32xbf16>, vector<2x32xf32> -> vector<2x32xf32>
    %182 = vector.extract_strided_slice %124 {offsets = [2, 24], sizes = [2, 8], strides = [1, 1]} : vector<8x32xbf16> to vector<2x8xbf16>
    %c8_114 = arith.constant 8 : index
    %c0_115 = arith.constant 0 : index
    %183 = vector.load %arg4[%c8_114, %c0_115] : memref<32x32xbf16, #tpu.memory_space<vmem>>, vector<8x32xbf16>
    %cst_116 = arith.constant dense<0.000000e+00> : vector<2x32xf32>
    %184 = tpu.matmul %182, %183, %cst_116 {dimension_numbers = #tpu.dot_dimension_numbers<[1], [0], [0], [1], [0, 0, 1, 1], [], []>} : vector<2x8xbf16>, vector<8x32xbf16>, vector<2x32xf32> -> vector<2x32xf32>
    %185 = arith.addf %181, %184 : vector<2x32xf32>
    %186 = vector.extract_strided_slice %124 {offsets = [4, 24], sizes = [2, 8], strides = [1, 1]} : vector<8x32xbf16> to vector<2x8xbf16>
    %c16_117 = arith.constant 16 : index
    %c0_118 = arith.constant 0 : index
    %187 = vector.load %arg4[%c16_117, %c0_118] : memref<32x32xbf16, #tpu.memory_space<vmem>>, vector<8x32xbf16>
    %cst_119 = arith.constant dense<0.000000e+00> : vector<2x32xf32>
    %188 = tpu.matmul %186, %187, %cst_119 {dimension_numbers = #tpu.dot_dimension_numbers<[1], [0], [0], [1], [0, 0, 1, 1], [], []>} : vector<2x8xbf16>, vector<8x32xbf16>, vector<2x32xf32> -> vector<2x32xf32>
    %189 = arith.addf %185, %188 : vector<2x32xf32>
    %190 = vector.extract_strided_slice %124 {offsets = [6, 24], sizes = [2, 8], strides = [1, 1]} : vector<8x32xbf16> to vector<2x8xbf16>
    %c24_120 = arith.constant 24 : index
    %c0_121 = arith.constant 0 : index
    %191 = vector.load %arg4[%c24_120, %c0_121] : memref<32x32xbf16, #tpu.memory_space<vmem>>, vector<8x32xbf16>
    %cst_122 = arith.constant dense<0.000000e+00> : vector<2x32xf32>
    %192 = tpu.matmul %190, %191, %cst_122 {dimension_numbers = #tpu.dot_dimension_numbers<[1], [0], [0], [1], [0, 0, 1, 1], [], []>} : vector<2x8xbf16>, vector<8x32xbf16>, vector<2x32xf32> -> vector<2x32xf32>
    %193 = arith.addf %189, %192 : vector<2x32xf32>
    %194 = vector.broadcast %6 : vector<1x32xf32> to vector<2x32xf32>
    %195 = arith.addf %193, %194 : vector<2x32xf32>
    %c14 = arith.constant 14 : index
    %c0_123 = arith.constant 0 : index
    %196 = vector.load %arg7[%c14, %c0_123] : memref<16x32xf32, #tpu.memory_space<vmem>>, vector<2x32xf32>
    tpu.vector_store %arg7[%c14, %c0_123], %195 {strides = array<i32>} : memref<16x32xf32, #tpu.memory_space<vmem>>, vector<2x32xf32>,
    return
  }
  func.func @transform_0(%arg0: i32) -> (i32, i32) {
    %c0_i32 = arith.constant 0 : i32
    %c0_i32_0 = arith.constant 0 : i32
    return %arg0, %c0_i32 : i32, i32
  }
  func.func @transform_1(%arg0: i32) -> (i32, i32) {
    %c0_i32 = arith.constant 0 : i32
    %c0_i32_0 = arith.constant 0 : i32
    %c0_i32_1 = arith.constant 0 : i32
    return %c0_i32, %c0_i32_0 : i32, i32
  }
  func.func @transform_2(%arg0: i32) -> (i32, i32) {
    %c0_i32 = arith.constant 0 : i32
    %c0_i32_0 = arith.constant 0 : i32
    %c0_i32_1 = arith.constant 0 : i32
    return %c0_i32, %c0_i32_0 : i32, i32
  }
  func.func @transform_3(%arg0: i32) -> (i32, i32) {
    %c0_i32 = arith.constant 0 : i32
    %c0_i32_0 = arith.constant 0 : i32
    %c0_i32_1 = arith.constant 0 : i32
    return %c0_i32, %c0_i32_0 : i32, i32
  }
  func.func @transform_4(%arg0: i32) -> (i32, i32) {
    %c0_i32 = arith.constant 0 : i32
    %c0_i32_0 = arith.constant 0 : i32
    %c0_i32_1 = arith.constant 0 : i32
    return %c0_i32, %c0_i32_0 : i32, i32
  }
  func.func @transform_5(%arg0: i32) -> (i32, i32) {
    %c0_i32 = arith.constant 0 : i32
    %c0_i32_0 = arith.constant 0 : i32
    %c0_i32_1 = arith.constant 0 : i32
    return %c0_i32, %c0_i32_0 : i32, i32
  }
  func.func @transform_6(%arg0: i32) -> (i32, i32) {
    %c0_i32 = arith.constant 0 : i32
    %c0_i32_0 = arith.constant 0 : i32
    return %arg0, %c0_i32 : i32, i32
  }
}

</mosaic_0001>

<bundles_post_ra>
// kernel: tpu_custom_call.1
= control target key start
LH: loop header
LB: loop body
LE: loop exit
PB: predicated region body
PF: predicated region fallthrough
CT: control target
= control target key end

     0   :  { %11 = vsyncpa [#allocation3], 0  ;;  %s2936_s0 = inlined_call_operand.hbm [shape: bf16[16,32], index: 0, kind: input, shape index: {}]   ;;  %s2937_s1 = inlined_call_operand.hbm [shape: bf16[32,96], index: 1, kind: input, shape index: {}]   ;;  %s2938_s2 = inlined_call_operand.vmem [shape: f32[1,96], index: 2, kind: input, shape index: {}]   ;;  %s2939_s3 = inlined_call_operand.hbm [shape: bf16[32,32], index: 3, kind: input, shape index: {}]   ;;  %s2940_s4 = inlined_call_operand.vmem [shape: f32[1,32], index: 4, kind: input, shape index: {}]   ;;  %s2941_s5 = inlined_call_operand.vmem [shape: bf16[8,8], index: 5, kind: input, shape index: {}]   ;;  %s2942_s6 = inlined_call_operand.hbm [shape: f32[16,32], index: 6, kind: output, shape index: {}]  }
   0x1   :  { %12 = vsyncpa [#allocation6], 0 }
   0x2   :  { %13 = vsyncpa [#allocation4], 0  ;;  %s2557_s21 = smov [#allocation5]   ;;  %s2558_s23 = smov [#allocation2]  }
   0x3   :  { %s31_s22 = sshll.u32 %s2557_s21, 4  ;;  %s19_s24 = sshll.u32 %s2558_s23, 4  ;;  %s32_s22 = int_to_ptr.vmem [resolvable:$true] %s31_s22  ;;  %s2606_s24 = int_to_ptr.vmem [resolvable:$true] %s19_s24 }
   0x4   :  { %s2463_s27 = scalar_lea.hbm %s2937_s1, 256 }
   0x5   :  { %p2464_p0 = scmp.ne.s32.totalorder %s2937_s1, %s2463_s27  ;;  %p2467_p1 = scmp.lt.u32.totalorder %s2463_s27, %s2937_s1 }
   0x7   :  { %p2469_p2 = pnand %p2467_p1, %p2464_p0 }
   0x9   :  { %2472 = shalt.err (!%p2469_p2)
}
   0xa   :  { %s2473_s8 = scalar_lea.vmem %s32_s22, 256  ;;  %p2478_p4 = scmp.lt.s32.totalorder %s32_s22, %s32_s22 }
   0xb   :  { %p2474_p3 = scmp.ne.s32.totalorder %s32_s22, %s2473_s8  ;;  %p2479_p5 = scmp.lt.s32.totalorder %s2473_s8, %s2473_s8 }
   0xd   :  { %p2480_p6 = por %p2479_p5, %p2478_p4 }
   0xf   :  { %p2481_p7 = pnand %p2480_p6, %p2474_p3 }
  0x11   :  { %2484 = shalt.err (!%p2481_p7)
}
  0x12   :  { %s2559_s9 = smov 64   ;;  %s2560_s10 = smov 4  }
  0x13   :  { %37 = dma.hbm_to_vmem [thread:$0]  %s2937_s1, 256, %s32_s22, [#allocation6], %s2559_s9, %s2559_s9, %s2560_s10  }
  0x14   :  { %s2485_s15 = scalar_lea.hbm %s2936_s0, 128 }
  0x15   :  { %p2486_p8 = scmp.ne.s32.totalorder %s2936_s0, %s2485_s15  ;;  %p2489_p9 = scmp.lt.u32.totalorder %s2485_s15, %s2936_s0 }
  0x17   :  { %p2491_p10 = pnand %p2489_p9, %p2486_p8 }
  0x19   :  { %2494 = shalt.err (!%p2491_p10)
}
  0x1a   :  { %s2495_s20 = scalar_lea.vmem %s2606_s24, 128  ;;  %p2500_p12 = scmp.lt.s32.totalorder %s2606_s24, %s2606_s24 }
  0x1b   :  { %p2496_p11 = scmp.ne.s32.totalorder %s2606_s24, %s2495_s20  ;;  %p2501_p13 = scmp.lt.s32.totalorder %s2495_s20, %s2495_s20 }
  0x1d   :  { %p2502_p0 = por %p2501_p13, %p2500_p12 }
  0x1f   :  { %p2503_p1 = pnand %p2502_p0, %p2496_p11 }
  0x21   :  { %2506 = shalt.err (!%p2503_p1)
}
  0x22   :  { %25 = dma.hbm_to_vmem [thread:$0]  %s2936_s0, 128, %s2606_s24, [#allocation3], %s2559_s9, %s2559_s9, %s2560_s10  }
  0x23   :  { %s2561_s22 = smov [#allocation7]   ;;  %s2507_s27 = scalar_lea.hbm %s2939_s3, 256 }
  0x24   :  { %s45_s23 = sshll.u32 %s2561_s22, 4  ;;  %p2508_p2 = scmp.ne.s32.totalorder %s2939_s3, %s2507_s27  ;;  %s46_s23 = int_to_ptr.vmem [resolvable:$true] %s45_s23 }
  0x25   :  { %p2511_p3 = scmp.lt.u32.totalorder %s2507_s27, %s2939_s3 }
  0x27   :  { %p2513_p4 = pnand %p2511_p3, %p2508_p2 }
  0x29   :  { %2516 = shalt.err (!%p2513_p4)
}
  0x2a   :  { %s2517_s8 = scalar_lea.vmem %s46_s23, 256  ;;  %p2522_p6 = scmp.lt.s32.totalorder %s46_s23, %s46_s23 }
  0x2b   :  { %p2518_p5 = scmp.ne.s32.totalorder %s46_s23, %s2517_s8  ;;  %p2523_p7 = scmp.lt.s32.totalorder %s2517_s8, %s2517_s8 }
  0x2d   :  { %p2524_p8 = por %p2523_p7, %p2522_p6 }
  0x2f   :  { %p2525_p9 = pnand %p2524_p8, %p2518_p5 }
  0x31   :  { %2528 = shalt.err (!%p2525_p9)
}
  0x32   :  { %51 = dma.hbm_to_vmem [thread:$0]  %s2939_s3, 256, %s46_s23, [#allocation6], %s2559_s9, %s2559_s9, %s2560_s10  }
  0x33   :  { %2551 = dma.done.wait [#allocation3], 128  }
  0x34   :  { %2552 = vsyncadd [#allocation3], 4294967168 }
  0x35   :  { %2553 = dma.done.wait [#allocation6], 512  }
  0x36   :  { %2554 = vsyncadd [#allocation6], 4294966784  ;;  %v2562_v0 = vmov 0.0   ;;  %vm2563_vm0 = vmmov 0   ;;  %v2452_v1 = vld [vmem:[#allocation5] sm:$0xff]   ;;  %v2453_v2 = vld [vmem:[#allocation5 + $0x8] sm:$0xff]  }
  0x37   :  { %2202 = vmatprep.subr.bf16.mxu0 %v2562_v0  ;;  %2206 = vmatprep.mubr.msk.bf16.mxu0 %vm2563_vm0, %v2562_v0  ;;  %v2454_v3 = vld [vmem:[#allocation2] sm:$0xff]   ;;  %vm96_vm1 = vcmask 261120   ;;  %s2564_s11 = smov 96   ;;  %vm209_vm2 = vcmask 1043456   ;;  %vm192_vm3 = vcmask 64512   ;;  %s2565_s13 = smov 120  }
  0x38   :  { %2210 = vmatprep.subr.bf16.mxu1 %v2562_v0  ;;  %2212 = vmatprep.mubr.msk.bf16.mxu1 %vm2563_vm0, %v2562_v0  ;;  %v2079_v4 = vld [vmem:[%s2938_s2] ss:$0 sm:$0xff]  ;;  %v303_v37 = vld [vmem:[#allocation7] sm:$0xf]  ;;  %v304_v39 = vld [vmem:[#allocation7 + $0x4] sm:$0xf] }
  0x39   :  { %2203 = vmatpush3.bf16.msra.mxu0 %v2452_v1  ;;  %v254_v36 = vld [vmem:[%s2941_s5] sm:$0xf]  ;;  %v357_v38 = vsel %vm209_vm2, %v303_v37, 0  ;;  %v311_v40 = vsel %vm209_vm2, %v304_v39, 0  ;;  %v448_v41 = vld [vmem:[#allocation7 + $0xc] sm:$0xf] }
  0x3a   :  { %2204 = vmatprep.subr.bf16.mxu0 %v2562_v0  ;;  %v454_v45 = vsel %vm209_vm2, %v448_v41, 0  ;;  %v399_v46 = vld [vmem:[#allocation7 + $0x8] sm:$0xf]  ;;  %v506_v52 = vld [vmem:[#allocation7] sm:$0xf]  ;;  %s2566_s14 = smov 112  }
  0x3b   :  { %v405_v51 = vsel %vm209_vm2, %v399_v46, 0  ;;  %v507_v54 = vld [vmem:[#allocation7 + $0x4] sm:$0xf]  ;;  %v562_v55 = vsel %vm209_vm2, %v506_v52, 0  ;;  %s2567_s15 = smov 104   ;;  %vm504_vm4 = vcmask 254976  }
  0x3c   :  { %v514_v56 = vsel %vm209_vm2, %v507_v54, 0  ;;  %v604_v58 = vld [vmem:[#allocation7 + $0x8] sm:$0xf]  ;;  %v707_v1 = vld [vmem:[#allocation7 + $0x4] sm:$0xf] }
  0x3d   :  { %2205 = vmatpush3.bf16.msra.mxu0 %v2453_v2  ;;  %v611_v59 = vsel %vm209_vm2, %v604_v58, 0  ;;  %v714_v2 = vsel %vm209_vm2, %v707_v1, 0 }
  0x3e   :  { %2216 = vmatprep.subr.bf16.mxu0 %v2562_v0 }
  0x40   :  { %2207 = vmatmul.mubr.msk.bf16.vlgmr.msra.gmra.mrb[0].mxu0 %vm96_vm1, %v2454_v3 }
  0x41   :  { %2218 = vmatprep.mubr.msk.bf16.mxu0 %vm2563_vm0, %v2562_v0 }
 0x113   :  { %v134_v5 = vpop.f32.mrb[0].mxu0 }
 0x114   :  { %v135_v6 = vadd.f32 %v2079_v4, %v134_v5  ;;  %v2208_v7 = vpop.f32.mrb[1].mxu0  ;;  %v654_v5 = vld [vmem:[#allocation7 + $0xc] sm:$0xf] }
 0x115   :  { %v137_v8 = vpop.f32.mrb[2].mxu0 }
 0x116   :  { %v142_v9 = vpack.c.bf16 %v135_v6, %v135_v6  ;;  %v2672_v10 = vadd.f32 %v2079_v4, %v137_v8  ;;  %v2209_v11 = vpop.f32.mrb[3].mxu0  ;;  %v661_v6 = vsel %vm209_vm2, %v654_v5, 0  ;;  %v804_v8 = vld [vmem:[#allocation7 + $0x8] sm:$0xf] }
 0x117   :  { %v706_v11 = vld [vmem:[#allocation7] sm:$0xf] }
 0x118   :  { %204 = vrot.lane.b32.xlu1 %v142_v9, %s2559_s9  ;;  %144 = vrot.lane.b32.xlu0 %v142_v9, %s2564_s11  ;;  %v2725_v57 = vpack.c.bf16 %v2672_v10, %v2672_v10  ;;  %v811_v10 = vsel %vm209_vm2, %v804_v8, 0 }
 0x18a   :  { %v205_v12 = vpop.permute.xlu1 %204  ;;  %v145_v13 = vpop.permute.xlu0 %144 }
 0x18b   :  { %v211_v14 = vsel %vm209_vm2, %v205_v12, 0  ;;  %v150_v15 = vsel %vm96_vm1, %v145_v13, 0  ;;  %v762_v12 = vsel %vm209_vm2, %v706_v11, 0 }
 0x18c   :  { %2211 = vmatpush3.bf16.xpose.msra.mxu1 %v150_v15  ;;  %2217 = vmatpush3.bf16.msra.mxu0 %v211_v14  ;;  %v907_v14 = vld [vmem:[#allocation7 + $0x4] sm:$0xf] }
 0x18d   :  { %2222 = vmatprep.subr.bf16.mxu1 %v2562_v0  ;;  %2228 = vmatprep.subr.bf16.mxu0 %v2562_v0  ;;  %v914_v15 = vsel %vm209_vm2, %v907_v14, 0 }
 0x193   :  { %2213 = vmatmul.mubr.msk.bf16.vlgmr.msra.gmra.mrb[0].mxu1 %vm96_vm1, %v142_v9 }
 0x194   :  { %2224 = vmatprep.mubr.msk.bf16.mxu1 %vm2563_vm0, %v2562_v0 }
 0x266   :  { %v186_v16 = vpop.f32.mrb[0].mxu1 }
 0x267   :  { %v2214_v17 = vpop.f32.mrb[1].mxu1  ;;  %v193_v18 = vsel %vm192_vm3, %v186_v16, -inf }
 0x268   :  { %194 = vmax.xlane.f32.xlu0 %v193_v18  ;;  %v189_v19 = vpop.f32.mrb[2].mxu1 }
 0x269   :  { %v2215_v20 = vpop.f32.mrb[3].mxu1  ;;  %v1004_v19 = vld [vmem:[#allocation7 + $0x8] sm:$0xf] }
 0x26a   :  { %v1011_v20 = vsel %vm209_vm2, %v1004_v19, 0 }
 0x2f5   :  { %v195_v21 = vpop.xlane.xlu0 %194 }
 0x2f6   :  { %v196_v22 = vsub.f32 %v186_v16, %v195_v21  ;;  %v854_v16 = vld [vmem:[#allocation7 + $0xc] sm:$0xf] }
 0x2f7   :  { %v861_v18 = vsel %vm209_vm2, %v854_v16, 0 }
 0x2f8   :  { %v197_v23 = vmul.f32 1.442695, %v196_v22  ;;  %v906_v22 = vld [vmem:[#allocation7] sm:$0xf] }
 0x2fa   :  { %2455 = vpow2.f32 %v197_v23  ;;  %v962_v23 = vsel %vm209_vm2, %v906_v22, 0 }
 0x304   :  { %v2456_v24 = vpop.eup %2455 }
 0x305   :  { %v199_v25 = vsel %vm192_vm3, %v2456_v24, 0.0  ;;  %v203_v26 = vpack.c.bf16 %v2456_v24, %v2456_v24 }
 0x306   :  { %200 = vadd.xlane.f32.xlu1 %v199_v25  ;;  %v1054_v25 = vld [vmem:[#allocation7 + $0xc] sm:$0xf] }
 0x307   :  { %2219 = vmatmul.mubr.msk.bf16.vlgmr.msra.gmra.mrb[4].mxu0 %vm192_vm3, %v203_v26 }
 0x308   :  { %2230 = vmatprep.mubr.msk.bf16.mxu0 %vm2563_vm0, %v2562_v0  ;;  %2229 = vmatpush3.bf16.msra.mxu0 %v311_v40 }
 0x309   :  { %2240 = vmatprep.subr.bf16.mxu0 %v2562_v0 }
 0x393   :  { %v201_v27 = vpop.xlane.xlu1 %200 }
 0x394   :  { %2457 = vrcp.f32 %v201_v27  ;;  %v1061_v27 = vsel %vm209_vm2, %v1054_v25, 0 }
 0x39e   :  { %v2458_v28 = vpop.eup %2457 }
 0x3da   :  { %v247_v29 = vpop.f32.mrb[4].mxu0 }
 0x3db   :  { %v253_v30 = vmul.f32 %v2458_v28, %v247_v29  ;;  %v2220_v31 = vpop.f32.mrb[5].mxu0 }
 0x3dc   :  { %v250_v32 = vpop.f32.mrb[6].mxu0 }
 0x3dd   :  { %v255_v33 = vpack.c.bf16 %v253_v30, %v253_v30  ;;  %v2221_v34 = vpop.f32.mrb[7].mxu0 }
 0x3df   :  { %v260_v35 = vsel %vm209_vm2, %v255_v33, 0 }
 0x3e0   :  { %2223 = vmatpush3.bf16.msra.mxu1 %v260_v35 }
 0x3e1   :  { %2234 = vmatprep.subr.bf16.mxu1 %v2562_v0 }
 0x3e3   :  { %2225 = vmatmul.mubr.msk.bf16.vlgmr.msra.gmra.mrb[4].mxu1 %vm192_vm3, %v254_v36 }
 0x3e4   :  { %2236 = vmatprep.mubr.msk.bf16.mxu1 %vm2563_vm0, %v2562_v0  ;;  %2235 = vmatpush3.bf16.msra.mxu1 %v357_v38 }
 0x3e5   :  { %2246 = vmatprep.subr.bf16.mxu1 %v2562_v0 }
 0x4b6   :  { %v296_v42 = vpop.f32.mrb[4].mxu1 }
 0x4b7   :  { %v302_v43 = vpack.c.bf16 %v296_v42, %v296_v42  ;;  %v2226_v44 = vpop.f32.mrb[5].mxu1 }
 0x4b8   :  { %v299_v47 = vpop.f32.mrb[6].mxu1 }
 0x4b9   :  { %v2227_v48 = vpop.f32.mrb[7].mxu1  ;;  %2237 = vmatmul.mubr.msk.bf16.vlgmr.msra.gmra.mrb[8].mxu1 %vm192_vm3, %v302_v43  ;;  %v400_v49 = vrot.slane %v302_v43, 2  ;;  %v306_v50 = vrot.slane %v302_v43, 1  ;;  %v449_v53 = vrot.slane %v302_v43, 3  ;;  %v2807_v47 = vld [vmem:[%s2940_s4] ss:$0 sm:$0xff] }
 0x4ba   :  { %2247 = vmatpush3.bf16.msra.mxu1 %v454_v45  ;;  %2248 = vmatprep.mubr.msk.bf16.mxu1 %vm2563_vm0, %v2562_v0 }
 0x4bb   :  { %605 = vrot.lane.b32.xlu1 %v400_v49, %s2565_s13  ;;  %508 = vrot.lane.b32.xlu0 %v306_v50, %s2565_s13 }
 0x4bc   :  { %2231 = vmatmul.mubr.msk.bf16.vlgmr.msra.gmra.mrb[8].mxu0 %vm192_vm3, %v306_v50  ;;  %2258 = vmatprep.subr.bf16.mxu1 %v2562_v0 }
 0x4bd   :  { %2241 = vmatpush3.bf16.msra.mxu0 %v405_v51  ;;  %2242 = vmatprep.mubr.msk.bf16.mxu0 %vm2563_vm0, %v2562_v0 }
 0x4be   :  { %2252 = vmatprep.subr.bf16.mxu0 %v2562_v0 }
 0x4bf   :  { %805 = vrot.lane.b32.xlu1 %v400_v49, %s2566_s14  ;;  %708 = vrot.lane.b32.xlu0 %v306_v50, %s2566_s14 }
 0x4c1   :  { %2249 = vmatmul.mubr.msk.bf16.vlgmr.msra.gmra.mrb[12].mxu1 %vm192_vm3, %v449_v53 }
 0x4c2   :  { %2259 = vmatpush3.bf16.msra.mxu1 %v562_v55  ;;  %2260 = vmatprep.mubr.msk.bf16.mxu1 %vm2563_vm0, %v2562_v0 }
 0x4c3   :  { %1005 = vrot.lane.b32.xlu1 %v400_v49, %s2567_s15  ;;  %908 = vrot.lane.b32.xlu0 %v306_v50, %s2567_s15 }
 0x4c4   :  { %2243 = vmatmul.mubr.msk.bf16.vlgmr.msra.gmra.mrb[12].mxu0 %vm192_vm3, %v400_v49  ;;  %2270 = vmatprep.subr.bf16.mxu1 %v2562_v0 }
 0x4c5   :  { %2253 = vmatpush3.bf16.msra.mxu0 %v514_v56  ;;  %2254 = vmatprep.mubr.msk.bf16.mxu0 %vm2563_vm0, %v2562_v0 }
 0x4c6   :  { %2264 = vmatprep.subr.bf16.mxu0 %v2562_v0 }
 0x4c7   :  { %556 = vrot.lane.b32.xlu1 %v302_v43, %s2565_s13  ;;  %1108 = vrot.lane.b32.xlu0 %v2725_v57, %s2564_s11 }
 0x4cb   :  { %756 = vrot.lane.b32.xlu1 %v302_v43, %s2566_s14  ;;  %655 = vrot.lane.b32.xlu0 %v449_v53, %s2565_s13 }
 0x4cf   :  { %855 = vrot.lane.b32.xlu1 %v449_v53, %s2566_s14 }
 0x4d3   :  { %956 = vrot.lane.b32.xlu1 %v302_v43, %s2567_s15 }
 0x4d7   :  { %1055 = vrot.lane.b32.xlu1 %v449_v53, %s2567_s15 }
 0x4db   :  { %1167 = vrot.lane.b32.xlu1 %v2725_v57, %s2559_s9 }
 0x52d   :  { %v606_v60 = vpop.permute.xlu1 %605  ;;  %v509_v61 = vpop.permute.xlu0 %508 }
 0x52e   :  { %2255 = vmatmul.mubr.msk.bf16.vlgmr.msra.gmra.mrb[16].mxu0 %vm192_vm3, %v509_v61 }
 0x52f   :  { %2265 = vmatpush3.bf16.msra.mxu0 %v611_v59  ;;  %2266 = vmatprep.mubr.msk.bf16.mxu0 %vm2563_vm0, %v2562_v0 }
 0x530   :  { %2276 = vmatprep.subr.bf16.mxu0 %v2562_v0 }
 0x531   :  { %v806_v62 = vpop.permute.xlu1 %805  ;;  %v709_v63 = vpop.permute.xlu0 %708 }
 0x535   :  { %v1006_v3 = vpop.permute.xlu1 %1005  ;;  %v909_v4 = vpop.permute.xlu0 %908 }
 0x536   :  { %2267 = vmatmul.mubr.msk.bf16.vlgmr.msra.gmra.mrb[20].mxu0 %vm192_vm3, %v606_v60 }
 0x537   :  { %2277 = vmatpush3.bf16.msra.mxu0 %v714_v2  ;;  %2278 = vmatprep.mubr.msk.bf16.mxu0 %vm2563_vm0, %v2562_v0 }
 0x538   :  { %2288 = vmatprep.subr.bf16.mxu0 %v2562_v0 }
 0x539   :  { %v557_v7 = vpop.permute.xlu1 %556  ;;  %v1109_v9 = vpop.permute.xlu0 %1108 }
 0x53a   :  { %2261 = vmatmul.mubr.msk.bf16.vlgmr.msra.gmra.mrb[16].mxu1 %vm192_vm3, %v557_v7  ;;  %v1114_v26 = vsel %vm96_vm1, %v1109_v9, 0 }
 0x53b   :  { %2271 = vmatpush3.bf16.msra.mxu1 %v661_v6  ;;  %2272 = vmatprep.mubr.msk.bf16.mxu1 %vm2563_vm0, %v2562_v0 }
 0x53c   :  { %2282 = vmatprep.subr.bf16.mxu1 %v2562_v0 }
 0x53d   :  { %v656_v13 = vpop.permute.xlu0 %655  ;;  %v757_v17 = vpop.permute.xlu1 %756 }
 0x53e   :  { %2279 = vmatmul.mubr.msk.bf16.vlgmr.msra.gmra.mrb[24].mxu0 %vm192_vm3, %v709_v63 }
 0x53f   :  { %2289 = vmatpush3.bf16.msra.mxu0 %v811_v10  ;;  %2290 = vmatprep.mubr.msk.bf16.mxu0 %vm2563_vm0, %v2562_v0 }
 0x540   :  { %2300 = vmatprep.subr.bf16.mxu0 %v2562_v0 }
 0x541   :  { %v856_v21 = vpop.permute.xlu1 %855 }
 0x542   :  { %2273 = vmatmul.mubr.msk.bf16.vlgmr.msra.gmra.mrb[20].mxu1 %vm192_vm3, %v656_v13 }
 0x543   :  { %2283 = vmatpush3.bf16.msra.mxu1 %v762_v12  ;;  %2284 = vmatprep.mubr.msk.bf16.mxu1 %vm2563_vm0, %v2562_v0 }
 0x544   :  { %2294 = vmatprep.subr.bf16.mxu1 %v2562_v0 }
 0x545   :  { %v957_v24 = vpop.permute.xlu1 %956 }
 0x546   :  { %2291 = vmatmul.mubr.msk.bf16.vlgmr.msra.gmra.mrb[28].mxu0 %vm192_vm3, %v806_v62 }
 0x547   :  { %2301 = vmatpush3.bf16.msra.mxu0 %v914_v15  ;;  %2302 = vmatprep.mubr.msk.bf16.mxu0 %vm2563_vm0, %v2562_v0 }
 0x548   :  { %2312 = vmatprep.subr.bf16.mxu0 %v2562_v0 }
 0x549   :  { %v1056_v28 = vpop.permute.xlu1 %1055 }
 0x54a   :  { %2285 = vmatmul.mubr.msk.bf16.vlgmr.msra.gmra.mrb[24].mxu1 %vm192_vm3, %v757_v17 }
 0x54b   :  { %2295 = vmatpush3.bf16.msra.mxu1 %v861_v18  ;;  %2296 = vmatprep.mubr.msk.bf16.mxu1 %vm2563_vm0, %v2562_v0 }
 0x54c   :  { %2306 = vmatprep.subr.bf16.mxu1 %v2562_v0 }
 0x54d   :  { %v1168_v29 = vpop.permute.xlu1 %1167 }
 0x54e   :  { %2303 = vmatmul.mubr.msk.bf16.vlgmr.msra.gmra.mrb[32].mxu0 %vm192_vm3, %v909_v4  ;;  %v1173_v30 = vsel %vm209_vm2, %v1168_v29, 0 }
 0x54f   :  { %2313 = vmatpush3.bf16.msra.mxu0 %v1011_v20  ;;  %2314 = vmatprep.mubr.msk.bf16.mxu0 %vm2563_vm0, %v2562_v0 }
 0x550   :  { %2324 = vmatprep.subr.bf16.mxu0 %v2562_v0 }
 0x552   :  { %2297 = vmatmul.mubr.msk.bf16.vlgmr.msra.gmra.mrb[28].mxu1 %vm192_vm3, %v856_v21 }
 0x553   :  { %2307 = vmatpush3.bf16.msra.mxu1 %v962_v23  ;;  %2308 = vmatprep.mubr.msk.bf16.mxu1 %vm2563_vm0, %v2562_v0 }
 0x554   :  { %2318 = vmatprep.subr.bf16.mxu1 %v2562_v0 }
 0x556   :  { %2315 = vmatmul.mubr.msk.bf16.vlgmr.msra.gmra.mrb[36].mxu0 %vm192_vm3, %v1006_v3 }
 0x557   :  { %2326 = vmatprep.mubr.msk.bf16.mxu0 %vm2563_vm0, %v2562_v0 }
 0x558   :  { %2325 = vmatpush3.bf16.xpose.msra.mxu0 %v1114_v26 }
 0x559   :  { %2336 = vmatprep.subr.bf16.mxu0 %v2562_v0 }
 0x55a   :  { %2309 = vmatmul.mubr.msk.bf16.vlgmr.msra.gmra.mrb[32].mxu1 %vm192_vm3, %v957_v24 }
 0x55b   :  { %2319 = vmatpush3.bf16.msra.mxu1 %v1061_v27  ;;  %2320 = vmatprep.mubr.msk.bf16.mxu1 %vm2563_vm0, %v2562_v0 }
 0x55c   :  { %2330 = vmatprep.subr.bf16.mxu1 %v2562_v0 }
 0x55f   :  { %2327 = vmatmul.mubr.msk.bf16.vlgmr.msra.gmra.mrb[40].mxu0 %vm96_vm1, %v2725_v57 }
 0x560   :  { %2338 = vmatprep.mubr.msk.bf16.mxu0 %vm2563_vm0, %v2562_v0 }
 0x562   :  { %2321 = vmatmul.mubr.msk.bf16.vlgmr.msra.gmra.mrb[36].mxu1 %vm192_vm3, %v1056_v28 }
 0x563   :  { %2331 = vmatpush3.bf16.msra.mxu1 %v1173_v30  ;;  %2332 = vmatprep.mubr.msk.bf16.mxu1 %vm2563_vm0, %v2562_v0 }
 0x564   :  { %2342 = vmatprep.subr.bf16.mxu1 %v2562_v0 }
 0x58c   :  { %v393_v31 = vpop.f32.mrb[8].mxu1 }
 0x58d   :  { %v2238_v32 = vpop.f32.mrb[9].mxu1 }
 0x58e   :  { %v396_v33 = vpop.f32.mrb[10].mxu1 }
 0x58f   :  { %v347_v34 = vpop.f32.mrb[8].mxu0  ;;  %v2239_v35 = vpop.f32.mrb[11].mxu1 }
 0x590   :  { %v394_v36 = vadd.f32 %v393_v31, %v347_v34  ;;  %v2232_v37 = vpop.f32.mrb[9].mxu0 }
 0x591   :  { %v350_v38 = vpop.f32.mrb[10].mxu0 }
 0x592   :  { %v2233_v39 = vpop.f32.mrb[11].mxu0 }
 0x594   :  { %v490_v40 = vpop.f32.mrb[12].mxu1 }
 0x595   :  { %v2250_v41 = vpop.f32.mrb[13].mxu1 }
 0x596   :  { %v493_v42 = vpop.f32.mrb[14].mxu1 }
 0x597   :  { %v441_v43 = vpop.f32.mrb[12].mxu0  ;;  %v2251_v44 = vpop.f32.mrb[15].mxu1 }
 0x598   :  { %v447_v45 = vadd.f32 %v441_v43, %v394_v36  ;;  %v2244_v46 = vpop.f32.mrb[13].mxu0 }
 0x599   :  { %v444_v48 = vpop.f32.mrb[14].mxu0 }
 0x59a   :  { %v496_v49 = vadd.f32 %v490_v40, %v447_v45  ;;  %v2245_v50 = vpop.f32.mrb[15].mxu0 }
 0x59c   :  { %v503_v51 = vadd.f32 %v2807_v47, %v496_v49 }
 0x59e   :  { %505 = vst.msk [vmem:[#allocation8] sm:$0x3] %vm504_vm4, %v503_v51 }
 0x601   :  { %v550_v52 = vpop.f32.mrb[16].mxu0 }
 0x602   :  { %v2256_v53 = vpop.f32.mrb[17].mxu0 }
 0x603   :  { %v553_v54 = vpop.f32.mrb[18].mxu0 }
 0x604   :  { %v2257_v55 = vpop.f32.mrb[19].mxu0 }
 0x609   :  { %v647_v56 = vpop.f32.mrb[20].mxu0 }
 0x60a   :  { %v2268_v57 = vpop.f32.mrb[21].mxu0 }
 0x60b   :  { %v650_v58 = vpop.f32.mrb[22].mxu0 }
 0x60c   :  { %v2269_v59 = vpop.f32.mrb[23].mxu0 }
 0x60d   :  { %v598_v60 = vpop.f32.mrb[16].mxu1 }
 0x60e   :  { %v599_v61 = vadd.f32 %v598_v60, %v550_v52  ;;  %v2262_v62 = vpop.f32.mrb[17].mxu1 }
 0x60f   :  { %v601_v63 = vpop.f32.mrb[18].mxu1 }
 0x610   :  { %v2263_v1 = vpop.f32.mrb[19].mxu1  ;;  %v653_v2 = vadd.f32 %v647_v56, %v599_v61 }
 0x611   :  { %v750_v3 = vpop.f32.mrb[24].mxu0 }
 0x612   :  { %v2280_v4 = vpop.f32.mrb[25].mxu0 }
 0x613   :  { %v753_v5 = vpop.f32.mrb[26].mxu0 }
 0x614   :  { %v2281_v6 = vpop.f32.mrb[27].mxu0 }
 0x615   :  { %v697_v7 = vpop.f32.mrb[20].mxu1 }
 0x616   :  { %v703_v8 = vadd.f32 %v697_v7, %v653_v2  ;;  %v2274_v9 = vpop.f32.mrb[21].mxu1  ;;  %v1216_v7 = vld [vmem:[%s2941_s5] sm:$0xf]  ;;  %s2568_s5 = smov [#allocation8]  }
 0x617   :  { %v700_v10 = vpop.f32.mrb[22].mxu1  ;;  %s2066_s18 = sshll.u32 %s2568_s5, 4  ;;  %s2067_s18 = int_to_ptr.vmem [resolvable:$true] %s2066_s18 }
 0x618   :  { %v704_v11 = vadd.f32 %v2807_v47, %v703_v8  ;;  %v2275_v12 = vpop.f32.mrb[23].mxu1  ;;  %v1265_v8 = vld [vmem:[#allocation7] sm:$0xf]  ;;  %v1266_v10 = vld [vmem:[#allocation7 + $0x4] sm:$0xf]  ;;  %s2529_s19 = scalar_lea.vmem %s2067_s18, 256  ;;  %p2534_p11 = scmp.lt.s32.totalorder %s2067_s18, %s2067_s18 }
 0x619   :  { %v847_v13 = vpop.f32.mrb[28].mxu0  ;;  %v1319_v9 = vsel %vm209_vm2, %v1265_v8, 0  ;;  %v1410_v12 = vld [vmem:[#allocation7 + $0xc] sm:$0xf]  ;;  %p2530_p10 = scmp.ne.s32.totalorder %s2067_s18, %s2529_s19  ;;  %p2535_p12 = scmp.lt.s32.totalorder %s2529_s19, %s2529_s19 }
 0x61a   :  { %705 = vst.msk [vmem:[#allocation8 + $0x2] sm:$0x3] %vm504_vm4, %v704_v11  ;;  %v2292_v14 = vpop.f32.mrb[29].mxu0  ;;  %v1273_v11 = vsel %vm209_vm2, %v1266_v10, 0 }
 0x61b   :  { %v850_v15 = vpop.f32.mrb[30].mxu0  ;;  %v1361_v14 = vld [vmem:[#allocation7 + $0x8] sm:$0xf]  ;;  %p2536_p13 = por %p2535_p12, %p2534_p11 }
 0x61c   :  { %v2293_v16 = vpop.f32.mrb[31].mxu0 }
 0x61d   :  { %v798_v17 = vpop.f32.mrb[24].mxu1  ;;  %p2537_p0 = pnand %p2536_p13, %p2530_p10 }
 0x61e   :  { %v799_v18 = vadd.f32 %v798_v17, %v750_v3  ;;  %v2286_v19 = vpop.f32.mrb[25].mxu1  ;;  %v1416_v17 = vsel %vm209_vm2, %v1410_v12, 0 }
 0x61f   :  { %v801_v20 = vpop.f32.mrb[26].mxu1 }
 0x620   :  { %v2287_v21 = vpop.f32.mrb[27].mxu1  ;;  %v853_v22 = vadd.f32 %v847_v13, %v799_v18 }
 0x621   :  { %v950_v23 = vpop.f32.mrb[32].mxu0  ;;  %v1367_v21 = vsel %vm209_vm2, %v1361_v14, 0 }
 0x622   :  { %v2304_v24 = vpop.f32.mrb[33].mxu0 }
 0x623   :  { %v953_v25 = vpop.f32.mrb[34].mxu0 }
 0x624   :  { %v2305_v26 = vpop.f32.mrb[35].mxu0  ;;  %v1462_v25 = vld [vmem:[#allocation7 + $0x4] sm:$0xf] }
 0x625   :  { %v897_v27 = vpop.f32.mrb[28].mxu1 }
 0x626   :  { %v903_v28 = vadd.f32 %v897_v27, %v853_v22  ;;  %v2298_v29 = vpop.f32.mrb[29].mxu1  ;;  %v1469_v27 = vsel %vm209_vm2, %v1462_v25, 0 }
 0x627   :  { %v900_v30 = vpop.f32.mrb[30].mxu1  ;;  %v1559_v29 = vld [vmem:[#allocation7 + $0x8] sm:$0xf] }
 0x628   :  { %v904_v31 = vadd.f32 %v2807_v47, %v903_v28  ;;  %v2299_v32 = vpop.f32.mrb[31].mxu1  ;;  %v1609_v28 = vld [vmem:[#allocation7 + $0xc] sm:$0xf] }
 0x629   :  { %v1047_v33 = vpop.f32.mrb[36].mxu0  ;;  %v1616_v30 = vsel %vm209_vm2, %v1609_v28, 0  ;;  %v1566_v32 = vsel %vm209_vm2, %v1559_v29, 0 }
 0x62a   :  { %905 = vst.msk [vmem:[#allocation8 + $0x4] sm:$0x3] %vm504_vm4, %v904_v31  ;;  %v2316_v34 = vpop.f32.mrb[37].mxu0 }
 0x62b   :  { %v1050_v35 = vpop.f32.mrb[38].mxu0 }
 0x62c   :  { %v2317_v36 = vpop.f32.mrb[39].mxu0  ;;  %v1662_v35 = vld [vmem:[#allocation7 + $0x4] sm:$0xf] }
 0x62d   :  { %v998_v37 = vpop.f32.mrb[32].mxu1  ;;  %v1661_v36 = vld [vmem:[#allocation7] sm:$0xf] }
 0x62e   :  { %v999_v38 = vadd.f32 %v998_v37, %v950_v23  ;;  %v2310_v39 = vpop.f32.mrb[33].mxu1  ;;  %v1461_v23 = vld [vmem:[#allocation7] sm:$0xf]  ;;  %v1669_v37 = vsel %vm209_vm2, %v1662_v35, 0 }
 0x62f   :  { %v1001_v40 = vpop.f32.mrb[34].mxu1  ;;  %v1517_v26 = vsel %vm209_vm2, %v1461_v23, 0 }
 0x630   :  { %v2311_v41 = vpop.f32.mrb[35].mxu1  ;;  %v1053_v42 = vadd.f32 %v1047_v33, %v999_v38  ;;  %v1717_v38 = vsel %vm209_vm2, %v1661_v36, 0 }
 0x631   :  { %v1759_v41 = vld [vmem:[#allocation7 + $0x8] sm:$0xf] }
 0x632   :  { %v1150_v43 = vpop.f32.mrb[40].mxu0 }
 0x633   :  { %v2328_v44 = vpop.f32.mrb[41].mxu0  ;;  %v1156_v45 = vsel %vm192_vm3, %v1150_v43, -inf }
 0x634   :  { %1157 = vmax.xlane.f32.xlu0 %v1156_v45  ;;  %v1153_v46 = vpop.f32.mrb[42].mxu0 }
 0x635   :  { %v2329_v48 = vpop.f32.mrb[43].mxu0  ;;  %v1097_v49 = vpop.f32.mrb[36].mxu1  ;;  %v1862_v46 = vld [vmem:[#allocation7 + $0x4] sm:$0xf] }
 0x636   :  { %v1103_v50 = vadd.f32 %v1097_v49, %v1053_v42  ;;  %v2322_v51 = vpop.f32.mrb[37].mxu1  ;;  %v1809_v42 = vld [vmem:[#allocation7 + $0xc] sm:$0xf]  ;;  %v1861_v48 = vld [vmem:[#allocation7] sm:$0xf]  ;;  %v1869_v49 = vsel %vm209_vm2, %v1862_v46, 0 }
 0x637   :  { %v1100_v52 = vpop.f32.mrb[38].mxu1  ;;  %v1816_v44 = vsel %vm209_vm2, %v1809_v42, 0 }
 0x638   :  { %v1104_v53 = vadd.f32 %v2807_v47, %v1103_v50  ;;  %v2323_v54 = vpop.f32.mrb[39].mxu1  ;;  %v1917_v50 = vsel %vm209_vm2, %v1861_v48, 0 }
 0x639   :  { %v2009_v54 = vld [vmem:[#allocation7 + $0xc] sm:$0xf] }
 0x63a   :  { %1105 = vst.msk [vmem:[#allocation8 + $0x6] sm:$0x3] %vm504_vm4, %v1104_v53  ;;  %v1959_v53 = vld [vmem:[#allocation7 + $0x8] sm:$0xf] }
 0x6c1   :  { %v1158_v55 = vpop.xlane.xlu0 %1157 }
 0x6c2   :  { %v1159_v56 = vsub.f32 %v1150_v43, %v1158_v55  ;;  %v1766_v43 = vsel %vm209_vm2, %v1759_v41, 0  ;;  %v1966_v55 = vsel %vm209_vm2, %v1959_v53, 0 }
 0x6c4   :  { %v1160_v57 = vmul.f32 1.442695, %v1159_v56  ;;  %v2016_v56 = vsel %vm209_vm2, %v2009_v54, 0 }
 0x6c6   :  { %2459 = vpow2.f32 %v1160_v57 }
 0x6d0   :  { %v2460_v58 = vpop.eup %2459 }
 0x6d1   :  { %v1162_v59 = vsel %vm192_vm3, %v2460_v58, 0.0  ;;  %v1166_v60 = vpack.c.bf16 %v2460_v58, %v2460_v58 }
 0x6d2   :  { %1163 = vadd.xlane.f32.xlu1 %v1162_v59 }
 0x6d3   :  { %2333 = vmatmul.mubr.msk.bf16.vlgmr.msra.gmra.mrb[40].mxu1 %vm192_vm3, %v1166_v60 }
 0x6d4   :  { %2344 = vmatprep.mubr.msk.bf16.mxu1 %vm2563_vm0, %v2562_v0  ;;  %2343 = vmatpush3.bf16.msra.mxu1 %v1273_v11 }
 0x6d5   :  { %2354 = vmatprep.subr.bf16.mxu1 %v2562_v0 }
 0x75f   :  { %v1164_v61 = vpop.xlane.xlu1 %1163 }
 0x760   :  { %2461 = vrcp.f32 %v1164_v61 }
 0x76a   :  { %v2462_v62 = vpop.eup %2461 }
 0x7a6   :  { %v1209_v63 = vpop.f32.mrb[40].mxu1 }
 0x7a7   :  { %v1215_v1 = vmul.f32 %v2462_v62, %v1209_v63  ;;  %v2334_v2 = vpop.f32.mrb[41].mxu1 }
 0x7a8   :  { %v1212_v3 = vpop.f32.mrb[42].mxu1 }
 0x7a9   :  { %v1217_v4 = vpack.c.bf16 %v1215_v1, %v1215_v1  ;;  %v2335_v5 = vpop.f32.mrb[43].mxu1 }
 0x7ab   :  { %v1222_v6 = vsel %vm209_vm2, %v1217_v4, 0 }
 0x7ac   :  { %2337 = vmatpush3.bf16.msra.mxu0 %v1222_v6 }
 0x7ad   :  { %2348 = vmatprep.subr.bf16.mxu0 %v2562_v0 }
 0x7af   :  { %2339 = vmatmul.mubr.msk.bf16.vlgmr.msra.gmra.mrb[44].mxu0 %vm192_vm3, %v1216_v7 }
 0x7b0   :  { %2350 = vmatprep.mubr.msk.bf16.mxu0 %vm2563_vm0, %v2562_v0  ;;  %2349 = vmatpush3.bf16.msra.mxu0 %v1319_v9 }
 0x7b1   :  { %2360 = vmatprep.subr.bf16.mxu0 %v2562_v0 }
 0x882   :  { %v1258_v13 = vpop.f32.mrb[44].mxu0 }
 0x883   :  { %v1264_v15 = vpack.c.bf16 %v1258_v13, %v1258_v13  ;;  %v2340_v16 = vpop.f32.mrb[45].mxu0 }
 0x884   :  { %v1261_v18 = vpop.f32.mrb[46].mxu0 }
 0x885   :  { %1511 = vrot.lane.b32.xlu1 %v1264_v15, %s2565_s13  ;;  %2351 = vmatmul.mubr.msk.bf16.vlgmr.msra.gmra.mrb[48].mxu0 %vm192_vm3, %v1264_v15  ;;  %v1268_v19 = vrot.slane %v1264_v15, 1  ;;  %v2341_v20 = vpop.f32.mrb[47].mxu0  ;;  %v1411_v22 = vrot.slane %v1264_v15, 3  ;;  %v1362_v24 = vrot.slane %v1264_v15, 2 }
 0x886   :  { %2361 = vmatpush3.bf16.msra.mxu0 %v1416_v17  ;;  %2362 = vmatprep.mubr.msk.bf16.mxu0 %vm2563_vm0, %v2562_v0 }
 0x887   :  { %1463 = vrot.lane.b32.xlu0 %v1268_v19, %s2565_s13  ;;  %2345 = vmatmul.mubr.msk.bf16.vlgmr.msra.gmra.mrb[44].mxu1 %vm192_vm3, %v1268_v19 }
 0x888   :  { %2355 = vmatpush3.bf16.msra.mxu1 %v1367_v21  ;;  %2356 = vmatprep.mubr.msk.bf16.mxu1 %vm2563_vm0, %v2562_v0 }
 0x889   :  { %1810 = vrot.lane.b32.xlu1 %v1411_v22, %s2566_s14  ;;  %2366 = vmatprep.subr.bf16.mxu1 %v2562_v0 }
 0x88a   :  { %2372 = vmatprep.subr.bf16.mxu0 %v2562_v0 }
 0x88b   :  { %1560 = vrot.lane.b32.xlu0 %v1362_v24, %s2565_s13 }
 0x88d   :  { %1911 = vrot.lane.b32.xlu1 %v1264_v15, %s2567_s15  ;;  %2363 = vmatmul.mubr.msk.bf16.vlgmr.msra.gmra.mrb[52].mxu0 %vm192_vm3, %v1411_v22 }
 0x88e   :  { %2373 = vmatpush3.bf16.msra.mxu0 %v1517_v26  ;;  %2374 = vmatprep.mubr.msk.bf16.mxu0 %vm2563_vm0, %v2562_v0 }
 0x88f   :  { %1610 = vrot.lane.b32.xlu0 %v1411_v22, %s2565_s13  ;;  %2357 = vmatmul.mubr.msk.bf16.vlgmr.msra.gmra.mrb[48].mxu1 %vm192_vm3, %v1362_v24 }
 0x890   :  { %2367 = vmatpush3.bf16.msra.mxu1 %v1469_v27  ;;  %2368 = vmatprep.mubr.msk.bf16.mxu1 %vm2563_vm0, %v2562_v0 }
 0x891   :  { %2010 = vrot.lane.b32.xlu1 %v1411_v22, %s2567_s15  ;;  %2378 = vmatprep.subr.bf16.mxu1 %v2562_v0 }
 0x892   :  { %2384 = vmatprep.subr.bf16.mxu0 %v2562_v0 }
 0x893   :  { %1663 = vrot.lane.b32.xlu0 %v1268_v19, %s2566_s14 }
 0x897   :  { %1711 = vrot.lane.b32.xlu0 %v1264_v15, %s2566_s14 }
 0x89b   :  { %1760 = vrot.lane.b32.xlu0 %v1362_v24, %s2566_s14 }
 0x89f   :  { %1863 = vrot.lane.b32.xlu0 %v1268_v19, %s2567_s15 }
 0x8a3   :  { %1960 = vrot.lane.b32.xlu0 %v1362_v24, %s2567_s15 }
 0x8f7   :  { %v1512_v31 = vpop.permute.xlu1 %1511 }
 0x8f8   :  { %2375 = vmatmul.mubr.msk.bf16.vlgmr.msra.gmra.mrb[56].mxu0 %vm192_vm3, %v1512_v31 }
 0x8f9   :  { %v1464_v33 = vpop.permute.xlu0 %1463  ;;  %2385 = vmatpush3.bf16.msra.mxu0 %v1616_v30  ;;  %2386 = vmatprep.mubr.msk.bf16.mxu0 %vm2563_vm0, %v2562_v0 }
 0x8fa   :  { %2369 = vmatmul.mubr.msk.bf16.vlgmr.msra.gmra.mrb[52].mxu1 %vm192_vm3, %v1464_v33  ;;  %2396 = vmatprep.subr.bf16.mxu0 %v2562_v0 }
 0x8fb   :  { %2379 = vmatpush3.bf16.msra.mxu1 %v1566_v32  ;;  %2380 = vmatprep.mubr.msk.bf16.mxu1 %vm2563_vm0, %v2562_v0  ;;  %v1811_v51 = vpop.permute.xlu1 %1810 }
 0x8fc   :  { %2390 = vmatprep.subr.bf16.mxu1 %v2562_v0 }
 0x8fd   :  { %v1561_v34 = vpop.permute.xlu0 %1560 }
 0x8ff   :  { %v1912_v57 = vpop.permute.xlu1 %1911 }
 0x901   :  { %v1611_v39 = vpop.permute.xlu0 %1610 }
 0x902   :  { %2381 = vmatmul.mubr.msk.bf16.vlgmr.msra.gmra.mrb[56].mxu1 %vm192_vm3, %v1561_v34  ;;  %2387 = vmatmul.mubr.msk.bf16.vlgmr.msra.gmra.mrb[60].mxu0 %vm192_vm3, %v1611_v39 }
 0x903   :  { %2391 = vmatpush3.bf16.msra.mxu1 %v1669_v37  ;;  %2397 = vmatpush3.bf16.msra.mxu0 %v1717_v38  ;;  %v2011_v59 = vpop.permute.xlu1 %2010 }
 0x904   :  { %2398 = vmatprep.mubr.msk.bf16.mxu0 %vm2563_vm0, %v2562_v0  ;;  %2392 = vmatprep.mubr.msk.bf16.mxu1 %vm2563_vm0, %v2562_v0 }
 0x905   :  { %v1664_v40 = vpop.permute.xlu0 %1663  ;;  %2402 = vmatprep.subr.bf16.mxu1 %v2562_v0  ;;  %2408 = vmatprep.subr.bf16.mxu0 %v2562_v0 }
 0x909   :  { %v1712_v45 = vpop.permute.xlu0 %1711 }
 0x90a   :  { %2393 = vmatmul.mubr.msk.bf16.vlgmr.msra.gmra.mrb[60].mxu1 %vm192_vm3, %v1664_v40  ;;  %2399 = vmatmul.mubr.msk.bf16.vlgmr.msra.gmra.mrb[64].mxu0 %vm192_vm3, %v1712_v45 }
 0x90b   :  { %2403 = vmatpush3.bf16.msra.mxu1 %v1766_v43  ;;  %2409 = vmatpush3.bf16.msra.mxu0 %v1816_v44 }
 0x90c   :  { %2410 = vmatprep.mubr.msk.bf16.mxu0 %vm2563_vm0, %v2562_v0  ;;  %2404 = vmatprep.mubr.msk.bf16.mxu1 %vm2563_vm0, %v2562_v0 }
 0x90d   :  { %2414 = vmatprep.subr.bf16.mxu1 %v2562_v0  ;;  %2420 = vmatprep.subr.bf16.mxu0 %v2562_v0  ;;  %v1761_v52 = vpop.permute.xlu0 %1760 }
 0x911   :  { %v1864_v58 = vpop.permute.xlu0 %1863 }
 0x912   :  { %2405 = vmatmul.mubr.msk.bf16.vlgmr.msra.gmra.mrb[64].mxu1 %vm192_vm3, %v1761_v52  ;;  %2411 = vmatmul.mubr.msk.bf16.vlgmr.msra.gmra.mrb[68].mxu0 %vm192_vm3, %v1811_v51 }
 0x913   :  { %2415 = vmatpush3.bf16.msra.mxu1 %v1869_v49  ;;  %2421 = vmatpush3.bf16.msra.mxu0 %v1917_v50 }
 0x914   :  { %2416 = vmatprep.mubr.msk.bf16.mxu1 %vm2563_vm0, %v2562_v0  ;;  %2422 = vmatprep.mubr.msk.bf16.mxu0 %vm2563_vm0, %v2562_v0 }
 0x915   :  { %2426 = vmatprep.subr.bf16.mxu1 %v2562_v0  ;;  %2432 = vmatprep.subr.bf16.mxu0 %v2562_v0  ;;  %v1961_v60 = vpop.permute.xlu0 %1960 }
 0x91a   :  { %2417 = vmatmul.mubr.msk.bf16.vlgmr.msra.gmra.mrb[68].mxu1 %vm192_vm3, %v1864_v58  ;;  %2423 = vmatmul.mubr.msk.bf16.vlgmr.msra.gmra.mrb[72].mxu0 %vm192_vm3, %v1912_v57 }
 0x91b   :  { %2427 = vmatpush3.bf16.msra.mxu1 %v1966_v55  ;;  %2433 = vmatpush3.bf16.msra.mxu0 %v2016_v56 }
 0x91c   :  { %2428 = vmatprep.mubr.msk.bf16.mxu1 %vm2563_vm0, %v2562_v0  ;;  %2434 = vmatprep.mubr.msk.bf16.mxu0 %vm2563_vm0, %v2562_v0 }
 0x922   :  { %2429 = vmatmul.mubr.msk.bf16.vlgmr.msra.gmra.mrb[72].mxu1 %vm192_vm3, %v1961_v60  ;;  %2435 = vmatmul.mubr.msk.bf16.vlgmr.msra.gmra.mrb[76].mxu0 %vm192_vm3, %v2011_v59 }
 0x958   :  { %v1355_v61 = vpop.f32.mrb[48].mxu0 }
 0x959   :  { %v2352_v62 = vpop.f32.mrb[49].mxu0 }
 0x95a   :  { %v1309_v63 = vpop.f32.mrb[44].mxu1  ;;  %v1358_v1 = vpop.f32.mrb[50].mxu0 }
 0x95b   :  { %v1356_v2 = vadd.f32 %v1355_v61, %v1309_v63  ;;  %v2346_v3 = vpop.f32.mrb[45].mxu1  ;;  %v2353_v4 = vpop.f32.mrb[51].mxu0 }
 0x95c   :  { %v1312_v5 = vpop.f32.mrb[46].mxu1 }
 0x95d   :  { %v2347_v6 = vpop.f32.mrb[47].mxu1 }
 0x960   :  { %v1452_v7 = vpop.f32.mrb[52].mxu0 }
 0x961   :  { %v2364_v8 = vpop.f32.mrb[53].mxu0 }
 0x962   :  { %v1403_v9 = vpop.f32.mrb[48].mxu1  ;;  %v1455_v10 = vpop.f32.mrb[54].mxu0 }
 0x963   :  { %v1409_v0 = vadd.f32 %v1403_v9, %v1356_v2  ;;  %v2358_v11 = vpop.f32.mrb[49].mxu1  ;;  %v2365_v12 = vpop.f32.mrb[55].mxu0 }
 0x964   :  { %v1406_v13 = vpop.f32.mrb[50].mxu1 }
 0x965   :  { %v1458_v14 = vadd.f32 %v1452_v7, %v1409_v0  ;;  %v2359_v15 = vpop.f32.mrb[51].mxu1 }
 0x967   :  { %v1459_v16 = vadd.f32 %v2807_v47, %v1458_v14 }
 0x969   :  { %1460 = vst.msk [vmem:[#allocation8 + $0x8] sm:$0x3] %vm504_vm4, %v1459_v16 }
 0x9cb   :  { %v1553_v17 = vpop.f32.mrb[56].mxu0 }
 0x9cc   :  { %v2376_v18 = vpop.f32.mrb[57].mxu0 }
 0x9cd   :  { %v1505_v19 = vpop.f32.mrb[52].mxu1  ;;  %v1556_v20 = vpop.f32.mrb[58].mxu0 }
 0x9ce   :  { %v1554_v21 = vadd.f32 %v1553_v17, %v1505_v19  ;;  %v2370_v22 = vpop.f32.mrb[53].mxu1  ;;  %v2377_v23 = vpop.f32.mrb[59].mxu0 }
 0x9cf   :  { %v1508_v24 = vpop.f32.mrb[54].mxu1 }
 0x9d0   :  { %v2371_v25 = vpop.f32.mrb[55].mxu1 }
 0x9d5   :  { %v1602_v26 = vpop.f32.mrb[56].mxu1  ;;  %v1652_v27 = vpop.f32.mrb[60].mxu0 }
 0x9d6   :  { %v1608_v28 = vadd.f32 %v1602_v26, %v1554_v21  ;;  %v2382_v29 = vpop.f32.mrb[57].mxu1  ;;  %v2388_v30 = vpop.f32.mrb[61].mxu0 }
 0x9d7   :  { %v1605_v31 = vpop.f32.mrb[58].mxu1  ;;  %v1655_v32 = vpop.f32.mrb[62].mxu0 }
 0x9d8   :  { %v1658_v33 = vadd.f32 %v1652_v27, %v1608_v28  ;;  %v2383_v34 = vpop.f32.mrb[59].mxu1  ;;  %v2389_v35 = vpop.f32.mrb[63].mxu0 }
 0x9da   :  { %v1659_v36 = vadd.f32 %v2807_v47, %v1658_v33 }
 0x9dc   :  { %1660 = vst.msk [vmem:[#allocation8 + $0xa] sm:$0x3] %vm504_vm4, %v1659_v36 }
 0x9dd   :  { %v1705_v37 = vpop.f32.mrb[60].mxu1  ;;  %v1753_v38 = vpop.f32.mrb[64].mxu0 }
 0x9de   :  { %v1754_v39 = vadd.f32 %v1753_v38, %v1705_v37  ;;  %v2394_v40 = vpop.f32.mrb[61].mxu1  ;;  %v2400_v41 = vpop.f32.mrb[65].mxu0 }
 0x9df   :  { %v1708_v42 = vpop.f32.mrb[62].mxu1  ;;  %v1756_v43 = vpop.f32.mrb[66].mxu0 }
 0x9e0   :  { %v2395_v44 = vpop.f32.mrb[63].mxu1  ;;  %v2401_v45 = vpop.f32.mrb[67].mxu0 }
 0x9e5   :  { %v1802_v46 = vpop.f32.mrb[64].mxu1  ;;  %v1852_v48 = vpop.f32.mrb[68].mxu0 }
 0x9e6   :  { %v1808_v49 = vadd.f32 %v1802_v46, %v1754_v39  ;;  %v2406_v50 = vpop.f32.mrb[65].mxu1  ;;  %v2412_v51 = vpop.f32.mrb[69].mxu0 }
 0x9e7   :  { %v1805_v52 = vpop.f32.mrb[66].mxu1  ;;  %v1855_v53 = vpop.f32.mrb[70].mxu0 }
 0x9e8   :  { %v1858_v54 = vadd.f32 %v1852_v48, %v1808_v49  ;;  %v2407_v55 = vpop.f32.mrb[67].mxu1  ;;  %v2413_v56 = vpop.f32.mrb[71].mxu0 }
 0x9ea   :  { %v1859_v57 = vadd.f32 %v2807_v47, %v1858_v54 }
 0x9ec   :  { %1860 = vst.msk [vmem:[#allocation8 + $0xc] sm:$0x3] %vm504_vm4, %v1859_v57 }
 0x9ed   :  { %v1905_v58 = vpop.f32.mrb[68].mxu1  ;;  %v1953_v59 = vpop.f32.mrb[72].mxu0 }
 0x9ee   :  { %v1954_v60 = vadd.f32 %v1953_v59, %v1905_v58  ;;  %v2418_v61 = vpop.f32.mrb[69].mxu1  ;;  %v2424_v62 = vpop.f32.mrb[73].mxu0 }
 0x9ef   :  { %v1908_v63 = vpop.f32.mrb[70].mxu1  ;;  %v1956_v1 = vpop.f32.mrb[74].mxu0 }
 0x9f0   :  { %v2419_v2 = vpop.f32.mrb[71].mxu1  ;;  %v2425_v3 = vpop.f32.mrb[75].mxu0 }
 0x9f5   :  { %v2002_v4 = vpop.f32.mrb[72].mxu1  ;;  %v2052_v5 = vpop.f32.mrb[76].mxu0 }
 0x9f6   :  { %v2008_v6 = vadd.f32 %v2002_v4, %v1954_v60  ;;  %v2430_v7 = vpop.f32.mrb[73].mxu1  ;;  %v2436_v8 = vpop.f32.mrb[77].mxu0 }
 0x9f7   :  { %v2005_v9 = vpop.f32.mrb[74].mxu1  ;;  %v2055_v10 = vpop.f32.mrb[78].mxu0 }
 0x9f8   :  { %v2058_v0 = vadd.f32 %v2052_v5, %v2008_v6  ;;  %v2431_v11 = vpop.f32.mrb[75].mxu1  ;;  %v2437_v12 = vpop.f32.mrb[79].mxu0 }
 0x9fa   :  { %v2059_v13 = vadd.f32 %v2807_v47, %v2058_v0 }
 0x9fc   :  { %2060 = vst.msk [vmem:[#allocation8 + $0xe] sm:$0x3] %vm504_vm4, %v2059_v13 }
 0x9fd   :  { %2540 = shalt.err (!%p2537_p0)
}
 0x9fe   :  { %s2541_s21 = scalar_lea.hbm %s2942_s6, 256 }
 0x9ff   :  { %p2542_p1 = scmp.ne.s32.totalorder %s2942_s6, %s2541_s21  ;;  %p2545_p2 = scmp.lt.u32.totalorder %s2541_s21, %s2942_s6 }
 0xa01   :  { %p2547_p3 = pnand %p2545_p2, %p2542_p1 }
 0xa03   :  { %2550 = shalt.err (!%p2547_p3)
}
 0xa04   :  { %s2569_s27 = smov 128   ;;  %s2570_s28 = smov 8  }
 0xa05   :  { %2072 = dma.vmem_to_hbm [thread:$0]  %s2067_s18, 256, %s2942_s6, [#allocation4], %s2569_s27, %s2569_s27, %s2570_s28  }
 0xa06   :  { %2555 = dma.done.wait [#allocation4], 256  }
 0xa07   :  { %2556 = vsyncadd [#allocation4], 4294967040 }
 0xa08   :  { %2076 = vsyncpa [#allocation3], 1 }
 0xa09   :  { %2077 = vsyncpa [#allocation6], 1 }
 0xa0a   :  { %2078 = vsyncpa [#allocation4], 1 }

</bundles_post_ra>
